<compile_context>
chip_gen: v7x
topology: tpu7x:2x2x1
jax: 0.10.0
libtpu: 0.0.40
codegen_flags: <defaults>
</compile_context>

<pallas_src>
import jax
import jax.numpy as jnp
from jax.experimental import pallas as pl
from jax.experimental.pallas import tpu as pltpu

IN_DIM = 28 * 28
H1, H2, H3 = 512, 256, 256
OUT_DIM = 10
OUT_PAD = 128   # lane-dense padded logits width
TB = 128        # batch tile (MXU-friendly row count on all generations)


def _mlp_kernel(x_ref,
                w1_ref, b1_ref,
                w2_ref, b2_ref,
                w3_ref, b3_ref,
                w4_ref, b4_ref,
                o_ref):
    # dense1 + ReLU : (TB, 784) bf16 @ (784, 512) bf16 -> f32 accumulate
    h = jnp.dot(x_ref[...], w1_ref[...], preferred_element_type=jnp.float32)
    h = jnp.maximum(h + b1_ref[...], 0.0)            # f32 bias, implicit broadcast
    # dense2 + ReLU
    h = jnp.dot(h.astype(jnp.bfloat16), w2_ref[...],
                preferred_element_type=jnp.float32)
    h = jnp.maximum(h + b2_ref[...], 0.0)
    # dense3 + ReLU
    h = jnp.dot(h.astype(jnp.bfloat16), w3_ref[...],
                preferred_element_type=jnp.float32)
    h = jnp.maximum(h + b3_ref[...], 0.0)
    # out (padded to 128 lanes, no activation)
    h = jnp.dot(h.astype(jnp.bfloat16), w4_ref[...],
                preferred_element_type=jnp.float32)
    o_ref[...] = (h + b4_ref[...]).astype(o_ref.dtype)


def dnn1_forward(x, params):
    """x: (B, 1, 28, 28) float32 (NCHW). Returns logits (B, 10) float32."""
    B = x.shape[0]
    x_flat = x.reshape(B, -1).astype(jnp.bfloat16)   # torch x.view(B, -1)

    (w1, b1), (w2, b2), (w3, b3), (w4, b4) = params

    # Lane-dense final layer: pad columns 10 -> 128 with zeros (sliced off below).
    w4p = jnp.pad(w4, ((0, 0), (0, OUT_PAD - OUT_DIM)))
    b4p = jnp.pad(b4, ((0, 0), (0, OUT_PAD - OUT_DIM)))

    # Pad batch up to a multiple of the batch tile.
    b_pad = pl.cdiv(B, TB) * TB
    if b_pad != B:
        x_flat = jnp.pad(x_flat, ((0, b_pad - B), (0, 0)))
    n_tiles = b_pad // TB

    # Weights/biases: constant index_map -> resident in VMEM across batch tiles.
    w_const = lambda a: pl.BlockSpec(a.shape, lambda i: (0, 0))

    weight_bytes = sum(
        int(w.size) * w.dtype.itemsize + int(b.size) * b.dtype.itemsize
        for w, b in ((w1, b1), (w2, b2), (w3, b3), (w4p, b4p)))
    cost = pl.CostEstimate(
        flops=2 * b_pad * (IN_DIM * H1 + H1 * H2 + H2 * H3 + H3 * OUT_PAD),
        transcendentals=0,
        bytes_accessed=weight_bytes + int(x_flat.size) * 2 + b_pad * OUT_PAD * 4,
    )

    out = pl.pallas_call(
        _mlp_kernel,
        out_shape=jax.ShapeDtypeStruct((b_pad, OUT_PAD), jnp.float32),
        grid=(n_tiles,),
        in_specs=[
            pl.BlockSpec((TB, IN_DIM), lambda i: (i, 0)),  # activations: pipelined per tile
            w_const(w1), w_const(b1),
            w_const(w2), w_const(b2),
            w_const(w3), w_const(b3),
            w_const(w4p), w_const(b4p),
        ],
        out_specs=pl.BlockSpec((TB, OUT_PAD), lambda i: (i, 0)),
        compiler_params=pltpu.CompilerParams(
            dimension_semantics=("parallel",),   # v7x: batch tiles split across 2 TCs
            vmem_limit_bytes=16 << 20,           # ~2.5 MiB actually needed; leave headroom
        ),
        cost_estimate=cost,
    )(x_flat, w1, b1, w2, b2, w3, b3, w4p, b4p)

    return out[:B, :OUT_DIM]


def init_params(key):
    """Deterministic init. Weights stored (in, out) in bf16; biases (1, out) f32."""
    sizes = [(IN_DIM, H1), (H1, H2), (H2, H3), (H3, OUT_DIM)]
    params = []
    for i, (fan_in, fan_out) in enumerate(sizes):
        kw, kb = jax.random.split(jax.random.fold_in(key, i))
        bound = 1.0 / jnp.sqrt(fan_in)  # nn.Linear default init range
        w = jax.random.uniform(kw, (fan_in, fan_out), jnp.float32, -bound, bound)
        b = jax.random.uniform(kb, (1, fan_out), jnp.float32, -bound, bound)
        params.append((w.astype(jnp.bfloat16), b))
    return params


def reference_forward(x, params):
    """Pure-JAX reference with matching precision (bf16 matmul inputs, f32 acc)."""
    (w1, b1), (w2, b2), (w3, b3), (w4, b4) = params
    h = x.reshape(x.shape[0], -1).astype(jnp.bfloat16)
    h = jnp.maximum(jnp.dot(h, w1, preferred_element_type=jnp.float32) + b1, 0.0)
    h = jnp.maximum(jnp.dot(h.astype(jnp.bfloat16), w2,
                            preferred_element_type=jnp.float32) + b2, 0.0)
    h = jnp.maximum(jnp.dot(h.astype(jnp.bfloat16), w3,
                            preferred_element_type=jnp.float32) + b3, 0.0)
    return jnp.dot(h.astype(jnp.bfloat16), w4,
                   preferred_element_type=jnp.float32) + b4


if __name__ == "__main__":
    key = jax.random.PRNGKey(0)
    kx, kp = jax.random.split(key)

    B = 2
    x = jax.random.normal(kx, (B, 1, 28, 28), jnp.float32)  # NCHW, MNIST-like
    params = init_params(kp)

    out = jax.block_until_ready(dnn1_forward(x, params))
    ref = reference_forward(x, params)

    assert out.shape == (B, OUT_DIM)
    assert jnp.allclose(out, ref, atol=5e-2, rtol=5e-2)

    print("KERNEL_OK")
</pallas_src>

<mosaic_0001>
module attributes {stable_mosaic.version = 11 : i64} {
  func.func @_mlp_kernel(%arg0: i32, %arg1: memref<128x784xbf16, #tpu.memory_space<vmem>>, %arg2: memref<784x512xbf16, #tpu.memory_space<vmem>>, %arg3: memref<1x512xf32, #tpu.memory_space<vmem>>, %arg4: memref<512x256xbf16, #tpu.memory_space<vmem>>, %arg5: memref<1x256xf32, #tpu.memory_space<vmem>>, %arg6: memref<256x256xbf16, #tpu.memory_space<vmem>>, %arg7: memref<1x256xf32, #tpu.memory_space<vmem>>, %arg8: memref<256x128xbf16, #tpu.memory_space<vmem>>, %arg9: memref<1x128xf32, #tpu.memory_space<vmem>>, %arg10: memref<128x128xf32, #tpu.memory_space<vmem>>) attributes {dimension_semantics = [#tpu.dimension_semantics<parallel>], iteration_bounds = array<i64: 1>, scalar_prefetch = 0 : i64, scratch_operands = 0 : i64, tpu.core_type = #tpu.core_type<tc>, window_params = [{transform_indices = @transform_0, window_bounds = array<i64: 128, 784>}, {pipeline_mode = #tpu.pipeline_mode<synchronous>, transform_indices = @transform_1, window_bounds = array<i64: 784, 512>}, {pipeline_mode = #tpu.pipeline_mode<synchronous>, transform_indices = @transform_2, window_bounds = array<i64: 1, 512>}, {pipeline_mode = #tpu.pipeline_mode<synchronous>, transform_indices = @transform_3, window_bounds = array<i64: 512, 256>}, {pipeline_mode = #tpu.pipeline_mode<synchronous>, transform_indices = @transform_4, window_bounds = array<i64: 1, 256>}, {pipeline_mode = #tpu.pipeline_mode<synchronous>, transform_indices = @transform_5, window_bounds = array<i64: 256, 256>}, {pipeline_mode = #tpu.pipeline_mode<synchronous>, transform_indices = @transform_6, window_bounds = array<i64: 1, 256>}, {pipeline_mode = #tpu.pipeline_mode<synchronous>, transform_indices = @transform_7, window_bounds = array<i64: 256, 128>}, {pipeline_mode = #tpu.pipeline_mode<synchronous>, transform_indices = @transform_8, window_bounds = array<i64: 1, 128>}, {transform_indices = @transform_9, window_bounds = array<i64: 128, 128>}]} {
    %c0 = arith.constant 0 : index
    %c0_0 = arith.constant 0 : index
    %0 = vector.load %arg1[%c0, %c0_0] : memref<128x784xbf16, #tpu.memory_space<vmem>>, vector<128x784xbf16>
    %c0_1 = arith.constant 0 : index
    %c0_2 = arith.constant 0 : index
    %1 = vector.load %arg2[%c0_1, %c0_2] : memref<784x512xbf16, #tpu.memory_space<vmem>>, vector<784x512xbf16>
    %cst = arith.constant dense<0.000000e+00> : vector<128x512xf32>
    %2 = tpu.matmul %0, %1, %cst {dimension_numbers = #tpu.dot_dimension_numbers<[1], [0], [0], [1], [0, 0, 1, 1], [], []>} : vector<128x784xbf16>, vector<784x512xbf16>, vector<128x512xf32> -> vector<128x512xf32>
    %c0_3 = arith.constant 0 : index
    %c0_4 = arith.constant 0 : index
    %3 = vector.load %arg3[%c0_3, %c0_4] : memref<1x512xf32, #tpu.memory_space<vmem>>, vector<1x512xf32>
    %4 = vector.broadcast %3 : vector<1x512xf32> to vector<128x512xf32>
    %5 = arith.addf %2, %4 : vector<128x512xf32>
    %cst_5 = arith.constant 0.000000e+00 : f32
    %6 = vector.broadcast %cst_5 : f32 to vector<128x512xf32>
    %7 = arith.maximumf %5, %6 : vector<128x512xf32>
    %8 = arith.truncf %7 : vector<128x512xf32> to vector<128x512xbf16>
    %c0_6 = arith.constant 0 : index
    %c0_7 = arith.constant 0 : index
    %9 = vector.load %arg4[%c0_6, %c0_7] : memref<512x256xbf16, #tpu.memory_space<vmem>>, vector<512x256xbf16>
    %cst_8 = arith.constant dense<0.000000e+00> : vector<128x256xf32>
    %10 = tpu.matmul %8, %9, %cst_8 {dimension_numbers = #tpu.dot_dimension_numbers<[1], [0], [0], [1], [0, 0, 1, 1], [], []>} : vector<128x512xbf16>, vector<512x256xbf16>, vector<128x256xf32> -> vector<128x256xf32>
    %c0_9 = arith.constant 0 : index
    %c0_10 = arith.constant 0 : index
    %11 = vector.load %arg5[%c0_9, %c0_10] : memref<1x256xf32, #tpu.memory_space<vmem>>, vector<1x256xf32>
    %12 = vector.broadcast %11 : vector<1x256xf32> to vector<128x256xf32>
    %13 = arith.addf %10, %12 : vector<128x256xf32>
    %cst_11 = arith.constant 0.000000e+00 : f32
    %14 = vector.broadcast %cst_11 : f32 to vector<128x256xf32>
    %15 = arith.maximumf %13, %14 : vector<128x256xf32>
    %16 = arith.truncf %15 : vector<128x256xf32> to vector<128x256xbf16>
    %c0_12 = arith.constant 0 : index
    %c0_13 = arith.constant 0 : index
    %17 = vector.load %arg6[%c0_12, %c0_13] : memref<256x256xbf16, #tpu.memory_space<vmem>>, vector<256x256xbf16>
    %cst_14 = arith.constant dense<0.000000e+00> : vector<128x256xf32>
    %18 = tpu.matmul %16, %17, %cst_14 {dimension_numbers = #tpu.dot_dimension_numbers<[1], [0], [0], [1], [0, 0, 1, 1], [], []>} : vector<128x256xbf16>, vector<256x256xbf16>, vector<128x256xf32> -> vector<128x256xf32>
    %c0_15 = arith.constant 0 : index
    %c0_16 = arith.constant 0 : index
    %19 = vector.load %arg7[%c0_15, %c0_16] : memref<1x256xf32, #tpu.memory_space<vmem>>, vector<1x256xf32>
    %20 = vector.broadcast %19 : vector<1x256xf32> to vector<128x256xf32>
    %21 = arith.addf %18, %20 : vector<128x256xf32>
    %cst_17 = arith.constant 0.000000e+00 : f32
    %22 = vector.broadcast %cst_17 : f32 to vector<128x256xf32>
    %23 = arith.maximumf %21, %22 : vector<128x256xf32>
    %24 = arith.truncf %23 : vector<128x256xf32> to vector<128x256xbf16>
    %c0_18 = arith.constant 0 : index
    %c0_19 = arith.constant 0 : index
    %25 = vector.load %arg8[%c0_18, %c0_19] : memref<256x128xbf16, #tpu.memory_space<vmem>>, vector<256x128xbf16>
    %cst_20 = arith.constant dense<0.000000e+00> : vector<128x128xf32>
    %26 = tpu.matmul %24, %25, %cst_20 {dimension_numbers = #tpu.dot_dimension_numbers<[1], [0], [0], [1], [0, 0, 1, 1], [], []>} : vector<128x256xbf16>, vector<256x128xbf16>, vector<128x128xf32> -> vector<128x128xf32>
    %c0_21 = arith.constant 0 : index
    %c0_22 = arith.constant 0 : index
    %27 = vector.load %arg9[%c0_21, %c0_22] : memref<1x128xf32, #tpu.memory_space<vmem>>, vector<1x128xf32>
    %28 = vector.broadcast %27 : vector<1x128xf32> to vector<128x128xf32>
    %29 = arith.addf %26, %28 : vector<128x128xf32>
    %c0_23 = arith.constant 0 : index
    %c0_24 = arith.constant 0 : index
    %30 = vector.load %arg10[%c0_23, %c0_24] : memref<128x128xf32, #tpu.memory_space<vmem>>, vector<128x128xf32>
    tpu.vector_store %arg10[%c0_23, %c0_24], %29 {strides = array<i32>} : memref<128x128xf32, #tpu.memory_space<vmem>>, vector<128x128xf32>,
    return
  }
  func.func @transform_0(%arg0: i32) -> (i32, i32) {
    %c0_i32 = arith.constant 0 : i32
    %c0_i32_0 = arith.constant 0 : i32
    return %arg0, %c0_i32 : i32, i32
  }
  func.func @transform_1(%arg0: i32) -> (i32, i32) {
    %c0_i32 = arith.constant 0 : i32
    %c0_i32_0 = arith.constant 0 : i32
    %c0_i32_1 = arith.constant 0 : i32
    return %c0_i32, %c0_i32_0 : i32, i32
  }
  func.func @transform_2(%arg0: i32) -> (i32, i32) {
    %c0_i32 = arith.constant 0 : i32
    %c0_i32_0 = arith.constant 0 : i32
    %c0_i32_1 = arith.constant 0 : i32
    return %c0_i32, %c0_i32_0 : i32, i32
  }
  func.func @transform_3(%arg0: i32) -> (i32, i32) {
    %c0_i32 = arith.constant 0 : i32
    %c0_i32_0 = arith.constant 0 : i32
    %c0_i32_1 = arith.constant 0 : i32
    return %c0_i32, %c0_i32_0 : i32, i32
  }
  func.func @transform_4(%arg0: i32) -> (i32, i32) {
    %c0_i32 = arith.constant 0 : i32
    %c0_i32_0 = arith.constant 0 : i32
    %c0_i32_1 = arith.constant 0 : i32
    return %c0_i32, %c0_i32_0 : i32, i32
  }
  func.func @transform_5(%arg0: i32) -> (i32, i32) {
    %c0_i32 = arith.constant 0 : i32
    %c0_i32_0 = arith.constant 0 : i32
    %c0_i32_1 = arith.constant 0 : i32
    return %c0_i32, %c0_i32_0 : i32, i32
  }
  func.func @transform_6(%arg0: i32) -> (i32, i32) {
    %c0_i32 = arith.constant 0 : i32
    %c0_i32_0 = arith.constant 0 : i32
    %c0_i32_1 = arith.constant 0 : i32
    return %c0_i32, %c0_i32_0 : i32, i32
  }
  func.func @transform_7(%arg0: i32) -> (i32, i32) {
    %c0_i32 = arith.constant 0 : i32
    %c0_i32_0 = arith.constant 0 : i32
    %c0_i32_1 = arith.constant 0 : i32
    return %c0_i32, %c0_i32_0 : i32, i32
  }
  func.func @transform_8(%arg0: i32) -> (i32, i32) {
    %c0_i32 = arith.constant 0 : i32
    %c0_i32_0 = arith.constant 0 : i32
    %c0_i32_1 = arith.constant 0 : i32
    return %c0_i32, %c0_i32_0 : i32, i32
  }
  func.func @transform_9(%arg0: i32) -> (i32, i32) {
    %c0_i32 = arith.constant 0 : i32
    %c0_i32_0 = arith.constant 0 : i32
    return %arg0, %c0_i32 : i32, i32
  }
}

</mosaic_0001>

<bundles_post_ra>
// kernel: tpu_custom_call.1
= control target key start
LH: loop header
LB: loop body
LE: loop exit
PB: predicated region body
PF: predicated region fallthrough
CT: control target
= control target key end

     0   :  { %14 = vsyncpa [#allocation3], 0  ;;  %s6118_s0 = inlined_call_operand.vmem [shape: bf16[128,784], index: 0, kind: input, shape index: {}]   ;;  %s6119_s1 = inlined_call_operand.hbm [shape: bf16[784,512], index: 1, kind: input, shape index: {}]   ;;  %s6120_s2 = inlined_call_operand.vmem [shape: f32[1,512], index: 2, kind: input, shape index: {}]   ;;  %s6121_s3 = inlined_call_operand.vmem [shape: bf16[512,256], index: 3, kind: input, shape index: {}]   ;;  %s6122_s4 = inlined_call_operand.vmem [shape: f32[1,256], index: 4, kind: input, shape index: {}]   ;;  %s6123_s5 = inlined_call_operand.vmem [shape: bf16[256,256], index: 5, kind: input, shape index: {}]   ;;  %s6124_s6 = inlined_call_operand.vmem [shape: f32[1,256], index: 6, kind: input, shape index: {}]   ;;  %s6125_s7 = inlined_call_operand.hbm [shape: bf16[256,128], index: 7, kind: input, shape index: {}]   ;;  %s6126_s8 = inlined_call_operand.vmem [shape: f32[1,128], index: 8, kind: input, shape index: {}]   ;;  %s6127_s9 = inlined_call_operand.hbm [shape: f32[128,128], index: 9, kind: output, shape index: {}]  }
   0x1   :  { %15 = vsyncpa [#allocation6], 0 }
   0x2   :  { %16 = vsyncpa [#allocation4], 0  ;;  %s5311_s30 = smov [#allocation2]   ;;  %s5239_s13 = scalar_lea.hbm %s6119_s1, 25088 }
   0x3   :  { %s24_s10 = sshll.u32 %s5311_s30, 4  ;;  %p5240_p0 = scmp.ne.s32.totalorder %s6119_s1, %s5239_s13  ;;  %s25_s10 = int_to_ptr.vmem [resolvable:$true] %s24_s10 }
   0x4   :  { %p5243_p1 = scmp.lt.u32.totalorder %s5239_s13, %s6119_s1 }
   0x6   :  { %p5245_p2 = pnand %p5243_p1, %p5240_p0 }
   0x8   :  { %5248 = shalt.err (!%p5245_p2)
}
   0x9   :  { %s5249_s18 = scalar_lea.vmem %s25_s10, 25088  ;;  %p5254_p4 = scmp.lt.s32.totalorder %s25_s10, %s25_s10 }
   0xa   :  { %p5250_p3 = scmp.ne.s32.totalorder %s25_s10, %s5249_s18  ;;  %p5255_p5 = scmp.lt.s32.totalorder %s5249_s18, %s5249_s18 }
   0xc   :  { %p5256_p6 = por %p5255_p5, %p5254_p4 }
   0xe   :  { %p5257_p7 = pnand %p5256_p6, %p5250_p3 }
  0x10   :  { %5260 = shalt.err (!%p5257_p7)
}
  0x11   :  { %s5312_s19 = smov 256   ;;  %s5313_s20 = smov 16  }
  0x12   :  { %30 = dma.hbm_to_vmem [thread:$0]  %s6119_s1, 25088, %s25_s10, [#allocation3], %s5312_s19, %s5312_s19, %s5313_s20  }
  0x13   :  { %s5314_s23 = smov [#allocation5]   ;;  %s5261_s27 = scalar_lea.hbm %s6125_s7, 2048 }
  0x14   :  { %s46_s24 = sshll.u32 %s5314_s23, 4  ;;  %p5262_p8 = scmp.ne.s32.totalorder %s6125_s7, %s5261_s27  ;;  %s47_s24 = int_to_ptr.vmem [resolvable:$true] %s46_s24 }
  0x15   :  { %p5265_p9 = scmp.lt.u32.totalorder %s5261_s27, %s6125_s7 }
  0x17   :  { %p5267_p10 = pnand %p5265_p9, %p5262_p8 }
  0x19   :  { %5270 = shalt.err (!%p5267_p10)
}
  0x1a   :  { %s5271_s12 = scalar_lea.vmem %s47_s24, 2048  ;;  %p5276_p12 = scmp.lt.s32.totalorder %s47_s24, %s47_s24 }
  0x1b   :  { %p5272_p11 = scmp.ne.s32.totalorder %s47_s24, %s5271_s12  ;;  %p5277_p13 = scmp.lt.s32.totalorder %s5271_s12, %s5271_s12 }
  0x1d   :  { %p5278_p0 = por %p5277_p13, %p5276_p12 }
  0x1f   :  { %p5279_p1 = pnand %p5278_p0, %p5272_p11 }
  0x21   :  { %5282 = shalt.err (!%p5279_p1)
}
  0x22   :  { %s5315_s1 = smov 64   ;;  %s5316_s10 = smov 4  }
  0x23   :  { %52 = dma.hbm_to_vmem [thread:$0]  %s6125_s7, 2048, %s47_s24, [#allocation6], %s5315_s1, %s5315_s1, %s5316_s10  }
  0x24   :  { %5305 = dma.done.wait [#allocation3], 25088  }
  0x25   :  { %5306 = vsyncadd [#allocation3], 4294942208 }
  0x26   :  { %5307 = dma.done.wait [#allocation6], 2048  }
  0x27   :  { %5308 = vsyncadd [#allocation6], 4294965248  ;;  %v4705_v0 = vld [vmem:[#allocation2 + $0x4] ss:$16 sps:$4 sm:$0xff]   ;;  %v4707_v1 = vld [vmem:[#allocation2 + $0xc] ss:$16 sps:$4 sm:$0xff]  }
  0x28   :  { %1629 = vmatprep.subr.bf16.mxu0 %v4705_v0  ;;  %v4709_v2 = vld [vmem:[#allocation2] ss:$16 sps:$4 sm:$0xff]   ;;  %v4710_v3 = vld [vmem:[#allocation2 + $0x8] ss:$16 sps:$4 sm:$0xff]   ;;  %2081 = vmatprep.subr.bf16.mxu1 %v4707_v1  ;;  %v4711_v4 = vld [vmem:[#allocation2 + $0x24] ss:$16 sps:$4 sm:$0xff]  }
  0x29   :  { %1630 = vmatpush1.bf16.msra.mxu0 %v4709_v2  ;;  %2082 = vmatpush1.bf16.msra.mxu1 %v4710_v3  ;;  %v4713_v5 = vld [vmem:[#allocation2 + $0x2c] ss:$16 sps:$4 sm:$0xff]   ;;  %v4715_v6 = vld [vmem:[#allocation2 + $0x20] ss:$16 sps:$4 sm:$0xff]   ;;  %v4716_v7 = vld [vmem:[#allocation2 + $0x28] ss:$16 sps:$4 sm:$0xff]  }
  0x2a   :  { %1631 = vmatprep.subr.bf16.mxu0 %v4711_v4  ;;  %2083 = vmatprep.subr.bf16.mxu1 %v4713_v5  ;;  %v4717_v8 = vld [vmem:[#allocation2 + $0x44] ss:$16 sps:$4 sm:$0xff]   ;;  %v4719_v9 = vld [vmem:[#allocation2 + $0x4c] ss:$16 sps:$4 sm:$0xff]   ;;  %v4721_v10 = vld [vmem:[#allocation2 + $0x40] ss:$16 sps:$4 sm:$0xff]  }
  0x2b   :  { %v4722_v11 = vld [vmem:[#allocation2 + $0x48] ss:$16 sps:$4 sm:$0xff]   ;;  %v4723_v12 = vld [vmem:[#allocation2 + $0x64] ss:$16 sps:$4 sm:$0xff]   ;;  %v4725_v13 = vld [vmem:[#allocation2 + $0x6c] ss:$16 sps:$4 sm:$0xff]  }
  0x2c   :  { %v4727_v14 = vld [vmem:[#allocation2 + $0x60] ss:$16 sps:$4 sm:$0xff]   ;;  %v4728_v15 = vld [vmem:[#allocation2 + $0x68] ss:$16 sps:$4 sm:$0xff]   ;;  %v4729_v16 = vld [vmem:[#allocation2 + $0x84] ss:$16 sps:$4 sm:$0xff]  }
  0x2d   :  { %1632 = vmatpush1.bf16.msra.mxu0 %v4715_v6  ;;  %2084 = vmatpush1.bf16.msra.mxu1 %v4716_v7  ;;  %v4731_v17 = vld [vmem:[#allocation2 + $0x8c] ss:$16 sps:$4 sm:$0xff]   ;;  %v4733_v18 = vld [vmem:[#allocation2 + $0x80] ss:$16 sps:$4 sm:$0xff]   ;;  %v4734_v19 = vld [vmem:[#allocation2 + $0x88] ss:$16 sps:$4 sm:$0xff]  }
  0x2e   :  { %1633 = vmatprep.subr.bf16.mxu0 %v4717_v8  ;;  %2085 = vmatprep.subr.bf16.mxu1 %v4719_v9  ;;  %v4735_v20 = vld [vmem:[#allocation2 + $0xa4] ss:$16 sps:$4 sm:$0xff]   ;;  %v4737_v21 = vld [vmem:[#allocation2 + $0xac] ss:$16 sps:$4 sm:$0xff]   ;;  %v4739_v22 = vld [vmem:[#allocation2 + $0xa0] ss:$16 sps:$4 sm:$0xff]  }
  0x2f   :  { %v4740_v23 = vld [vmem:[#allocation2 + $0xa8] ss:$16 sps:$4 sm:$0xff]   ;;  %v4741_v24 = vld [vmem:[#allocation2 + $0xc4] ss:$16 sps:$4 sm:$0xff]   ;;  %v4743_v25 = vld [vmem:[#allocation2 + $0xcc] ss:$16 sps:$4 sm:$0xff]  }
  0x30   :  { %v4745_v26 = vld [vmem:[#allocation2 + $0xc0] ss:$16 sps:$4 sm:$0xff]   ;;  %v4746_v27 = vld [vmem:[#allocation2 + $0xc8] ss:$16 sps:$4 sm:$0xff]   ;;  %v4747_v28 = vld [vmem:[#allocation2 + $0xe4] ss:$16 sps:$4 sm:$0xff]  }
  0x31   :  { %1634 = vmatpush1.bf16.msra.mxu0 %v4721_v10  ;;  %2086 = vmatpush1.bf16.msra.mxu1 %v4722_v11  ;;  %v4749_v29 = vld [vmem:[#allocation2 + $0xec] ss:$16 sps:$4 sm:$0xff]   ;;  %v4751_v30 = vld [vmem:[#allocation2 + $0xe0] ss:$16 sps:$4 sm:$0xff]   ;;  %v4752_v31 = vld [vmem:[#allocation2 + $0xe8] ss:$16 sps:$4 sm:$0xff]  }
  0x32   :  { %1635 = vmatprep.subr.bf16.mxu0 %v4723_v12  ;;  %2087 = vmatprep.subr.bf16.mxu1 %v4725_v13  ;;  %v4753_v32 = vld [vmem:[#allocation2 + $0x104] ss:$16 sps:$4 sm:$0xff]   ;;  %v4755_v33 = vld [vmem:[#allocation2 + $0x10c] ss:$16 sps:$4 sm:$0xff]   ;;  %v4757_v34 = vld [vmem:[#allocation2 + $0x100] ss:$16 sps:$4 sm:$0xff]  }
  0x33   :  { %v4758_v35 = vld [vmem:[#allocation2 + $0x108] ss:$16 sps:$4 sm:$0xff]   ;;  %v4759_v36 = vld [vmem:[#allocation2 + $0x124] ss:$16 sps:$4 sm:$0xff]   ;;  %v4761_v37 = vld [vmem:[#allocation2 + $0x12c] ss:$16 sps:$4 sm:$0xff]  }
  0x34   :  { %v4763_v38 = vld [vmem:[#allocation2 + $0x120] ss:$16 sps:$4 sm:$0xff]   ;;  %v4764_v39 = vld [vmem:[#allocation2 + $0x128] ss:$16 sps:$4 sm:$0xff]   ;;  %v4765_v40 = vld [vmem:[#allocation2 + $0x144] ss:$16 sps:$4 sm:$0xff]  }
  0x35   :  { %1636 = vmatpush1.bf16.msra.mxu0 %v4727_v14  ;;  %2088 = vmatpush1.bf16.msra.mxu1 %v4728_v15  ;;  %v4767_v41 = vld [vmem:[#allocation2 + $0x14c] ss:$16 sps:$4 sm:$0xff]   ;;  %v4769_v42 = vld [vmem:[#allocation2 + $0x140] ss:$16 sps:$4 sm:$0xff]   ;;  %v4770_v43 = vld [vmem:[#allocation2 + $0x148] ss:$16 sps:$4 sm:$0xff]  }
  0x36   :  { %1637 = vmatprep.subr.bf16.mxu0 %v4729_v16  ;;  %2089 = vmatprep.subr.bf16.mxu1 %v4731_v17  ;;  %v4771_v44 = vld [vmem:[#allocation2 + $0x164] ss:$16 sps:$4 sm:$0xff]   ;;  %v4773_v45 = vld [vmem:[#allocation2 + $0x16c] ss:$16 sps:$4 sm:$0xff]   ;;  %v4775_v46 = vld [vmem:[#allocation2 + $0x160] ss:$16 sps:$4 sm:$0xff]  }
  0x37   :  { %v4776_v47 = vld [vmem:[#allocation2 + $0x168] ss:$16 sps:$4 sm:$0xff]   ;;  %v4803_v48 = vld [vmem:[%s6118_s0 + $0x4] ss:$28 sps:$4 sm:$0xff]   ;;  %v4779_v50 = vld [vmem:[#allocation2 + $0x18c] ss:$16 sps:$4 sm:$0xff]  }
  0x38   :  { %v4777_v49 = vld [vmem:[#allocation2 + $0x184] ss:$16 sps:$4 sm:$0xff]   ;;  %1661 = vmatprep.mubr.bf16.mxu0 %v4803_v48  ;;  %2113 = vmatprep.mubr.bf16.mxu1 %v4803_v48  ;;  %v4781_v51 = vld [vmem:[#allocation2 + $0x180] ss:$16 sps:$4 sm:$0xff]   ;;  %v4782_v52 = vld [vmem:[#allocation2 + $0x188] ss:$16 sps:$4 sm:$0xff]  }
  0x39   :  { %1638 = vmatpush1.bf16.msra.mxu0 %v4733_v18  ;;  %2090 = vmatpush1.bf16.msra.mxu1 %v4734_v19  ;;  %v4783_v53 = vld [vmem:[#allocation2 + $0x1a4] ss:$16 sps:$4 sm:$0xff]   ;;  %v4785_v54 = vld [vmem:[#allocation2 + $0x1ac] ss:$16 sps:$4 sm:$0xff]   ;;  %v4787_v55 = vld [vmem:[#allocation2 + $0x1a0] ss:$16 sps:$4 sm:$0xff]  }
  0x3a   :  { %1639 = vmatprep.subr.bf16.mxu0 %v4735_v20  ;;  %2091 = vmatprep.subr.bf16.mxu1 %v4737_v21  ;;  %v4788_v56 = vld [vmem:[#allocation2 + $0x1a8] ss:$16 sps:$4 sm:$0xff]   ;;  %v4789_v57 = vld [vmem:[#allocation2 + $0x1c4] ss:$16 sps:$4 sm:$0xff]   ;;  %v4791_v58 = vld [vmem:[#allocation2 + $0x1cc] ss:$16 sps:$4 sm:$0xff]  }
  0x3b   :  { %v4793_v59 = vld [vmem:[#allocation2 + $0x1c0] ss:$16 sps:$4 sm:$0xff]   ;;  %v4794_v60 = vld [vmem:[#allocation2 + $0x1c8] ss:$16 sps:$4 sm:$0xff]   ;;  %v4795_v61 = vld [vmem:[#allocation2 + $0x1e4] ss:$16 sps:$4 sm:$0xff]  }
  0x3c   :  { %v4797_v62 = vld [vmem:[#allocation2 + $0x1ec] ss:$16 sps:$4 sm:$0xff]   ;;  %v4799_v63 = vld [vmem:[#allocation2 + $0x1e0] ss:$16 sps:$4 sm:$0xff]   ;;  %v4800_v0 = vld [vmem:[#allocation2 + $0x1e8] ss:$16 sps:$4 sm:$0xff]  }
  0x3d   :  { %1640 = vmatpush1.bf16.msra.mxu0 %v4739_v22  ;;  %2092 = vmatpush1.bf16.msra.mxu1 %v4740_v23  ;;  %v4806_v1 = vld [vmem:[#allocation2 + $0x204] ss:$16 sps:$4 sm:$0xff]   ;;  %v4809_v2 = vld [vmem:[#allocation2 + $0x20c] ss:$16 sps:$4 sm:$0xff]   ;;  %v4804_v4 = vld [vmem:[#allocation2 + $0x200] ss:$16 sps:$4 sm:$0xff]  }
  0x3e   :  { %1641 = vmatprep.subr.bf16.mxu0 %v4741_v24  ;;  %2093 = vmatprep.subr.bf16.mxu1 %v4743_v25  ;;  %v4801_v3 = vld [vmem:[%s6118_s0] ss:$28 sps:$4 sm:$0xff]   ;;  %v4807_v5 = vld [vmem:[#allocation2 + $0x208] ss:$16 sps:$4 sm:$0xff]   ;;  %v4812_v6 = vld [vmem:[#allocation2 + $0x224] ss:$16 sps:$4 sm:$0xff]  }
  0x3f   :  { %v4815_v7 = vld [vmem:[#allocation2 + $0x22c] ss:$16 sps:$4 sm:$0xff]   ;;  %v4810_v9 = vld [vmem:[#allocation2 + $0x220] ss:$16 sps:$4 sm:$0xff]   ;;  %v4813_v10 = vld [vmem:[#allocation2 + $0x228] ss:$16 sps:$4 sm:$0xff]  }
  0x40   :  { %v4816_v8 = vld [vmem:[%s6118_s0 + $0x3c] ss:$28 sps:$4 sm:$0xff]   ;;  %v4821_v11 = vld [vmem:[#allocation2 + $0x244] ss:$16 sps:$4 sm:$0xff]   ;;  %v4819_v14 = vld [vmem:[#allocation2 + $0x240] ss:$16 sps:$4 sm:$0xff]  }
  0x41   :  { %1642 = vmatpush1.bf16.msra.mxu0 %v4745_v26  ;;  %2094 = vmatpush1.bf16.msra.mxu1 %v4746_v27  ;;  %v4824_v12 = vld [vmem:[#allocation2 + $0x24c] ss:$16 sps:$4 sm:$0xff]   ;;  %v4818_v13 = vld [vmem:[%s6118_s0 + $0x38] ss:$28 sps:$4 sm:$0xff]   ;;  %v4825_v19 = vld [vmem:[#allocation2 + $0x260] ss:$16 sps:$4 sm:$0xff]  }
  0x42   :  { %1643 = vmatprep.subr.bf16.mxu0 %v4747_v28  ;;  %2095 = vmatprep.subr.bf16.mxu1 %v4749_v29  ;;  %v4822_v15 = vld [vmem:[#allocation2 + $0x248] ss:$16 sps:$4 sm:$0xff]   ;;  %v4827_v16 = vld [vmem:[#allocation2 + $0x264] ss:$16 sps:$4 sm:$0xff]   ;;  %v4830_v17 = vld [vmem:[#allocation2 + $0x26c] ss:$16 sps:$4 sm:$0xff]  }
  0x43   :  { %v4831_v18 = vld [vmem:[%s6118_s0 + $0x74] ss:$28 sps:$4 sm:$0xff]   ;;  %v4828_v20 = vld [vmem:[#allocation2 + $0x268] ss:$16 sps:$4 sm:$0xff]   ;;  %v4839_v22 = vld [vmem:[#allocation2 + $0x28c] ss:$16 sps:$4 sm:$0xff]  }
  0x44   :  { %v4836_v21 = vld [vmem:[#allocation2 + $0x284] ss:$16 sps:$4 sm:$0xff]   ;;  %v4833_v23 = vld [vmem:[%s6118_s0 + $0x70] ss:$28 sps:$4 sm:$0xff]   ;;  %v4837_v25 = vld [vmem:[#allocation2 + $0x288] ss:$16 sps:$4 sm:$0xff]  }
  0x45   :  { %1644 = vmatpush1.bf16.msra.mxu0 %v4751_v30  ;;  %2096 = vmatpush1.bf16.msra.mxu1 %v4752_v31  ;;  %v4834_v24 = vld [vmem:[#allocation2 + $0x280] ss:$16 sps:$4 sm:$0xff]   ;;  %v4842_v26 = vld [vmem:[#allocation2 + $0x2a4] ss:$16 sps:$4 sm:$0xff]   ;;  %v4845_v27 = vld [vmem:[#allocation2 + $0x2ac] ss:$16 sps:$4 sm:$0xff]  }
  0x46   :  { %1645 = vmatprep.subr.bf16.mxu0 %v4753_v32  ;;  %2097 = vmatprep.subr.bf16.mxu1 %v4755_v33  ;;  %v4846_v28 = vld [vmem:[%s6118_s0 + $0xac] ss:$28 sps:$4 sm:$0xff]   ;;  %v4840_v29 = vld [vmem:[#allocation2 + $0x2a0] ss:$16 sps:$4 sm:$0xff]   ;;  %v4851_v31 = vld [vmem:[#allocation2 + $0x2c4] ss:$16 sps:$4 sm:$0xff]  }
  0x47   :  { %v4843_v30 = vld [vmem:[#allocation2 + $0x2a8] ss:$16 sps:$4 sm:$0xff]   ;;  %v4854_v32 = vld [vmem:[#allocation2 + $0x2cc] ss:$16 sps:$4 sm:$0xff]   ;;  %vm1604_vm0 = vcmask 130048  }
  0x48   :  { %v4848_v33 = vld [vmem:[%s6118_s0 + $0xa8] ss:$28 sps:$4 sm:$0xff]   ;;  %v4876_v48 = vld [vmem:[%s6118_s0 + $0x11c] ss:$28 sps:$4 sm:$0xff]  }
  0x49   :  { %1646 = vmatpush1.bf16.msra.mxu0 %v4757_v34  ;;  %2098 = vmatpush1.bf16.msra.mxu1 %v4758_v35  ;;  %v4849_v34 = vld [vmem:[#allocation2 + $0x2c0] ss:$16 sps:$4 sm:$0xff]   ;;  %v4852_v35 = vld [vmem:[#allocation2 + $0x2c8] ss:$16 sps:$4 sm:$0xff]  }
  0x4a   :  { %1647 = vmatprep.subr.bf16.mxu0 %v4759_v36  ;;  %2099 = vmatprep.subr.bf16.mxu1 %v4761_v37  ;;  %v4857_v36 = vld [vmem:[#allocation2 + $0x2e4] ss:$16 sps:$4 sm:$0xff]   ;;  %v4860_v37 = vld [vmem:[#allocation2 + $0x2ec] ss:$16 sps:$4 sm:$0xff]  }
  0x4d   :  { %1648 = vmatpush1.bf16.msra.mxu0 %v4763_v38  ;;  %2100 = vmatpush1.bf16.msra.mxu1 %v4764_v39  ;;  %v4861_v38 = vld [vmem:[%s6118_s0 + $0xe4] ss:$28 sps:$4 sm:$0xff]  }
  0x4e   :  { %1649 = vmatprep.subr.bf16.mxu0 %v4765_v40  ;;  %2101 = vmatprep.subr.bf16.mxu1 %v4767_v41  ;;  %v4855_v39 = vld [vmem:[#allocation2 + $0x2e0] ss:$16 sps:$4 sm:$0xff]   ;;  %v4858_v40 = vld [vmem:[#allocation2 + $0x2e8] ss:$16 sps:$4 sm:$0xff]   ;;  %v4866_v41 = vld [vmem:[#allocation2 + $0x304] ss:$16 sps:$4 sm:$0xff]  }
  0x51   :  { %1650 = vmatpush1.bf16.msra.mxu0 %v4769_v42  ;;  %2102 = vmatpush1.bf16.msra.mxu1 %v4770_v43  ;;  %v4869_v42 = vld [vmem:[#allocation2 + $0x30c] ss:$16 sps:$4 sm:$0xff]  }
  0x52   :  { %1651 = vmatprep.subr.bf16.mxu0 %v4771_v44  ;;  %2103 = vmatprep.subr.bf16.mxu1 %v4773_v45  ;;  %v4863_v43 = vld [vmem:[%s6118_s0 + $0xe0] ss:$28 sps:$4 sm:$0xff]   ;;  %v4867_v45 = vld [vmem:[#allocation2 + $0x308] ss:$16 sps:$4 sm:$0xff]  }
  0x53   :  { %v4864_v44 = vld [vmem:[#allocation2 + $0x300] ss:$16 sps:$4 sm:$0xff]  }
  0x55   :  { %1652 = vmatpush1.bf16.msra.mxu0 %v4775_v46  ;;  %2104 = vmatpush1.bf16.msra.mxu1 %v4776_v47  ;;  %v4872_v46 = vld [vmem:[#allocation2 + $0x324] ss:$16 sps:$4 sm:$0xff]   ;;  %v4875_v47 = vld [vmem:[#allocation2 + $0x32c] ss:$16 sps:$4 sm:$0xff]  }
  0x56   :  { %1653 = vmatprep.subr.bf16.mxu0 %v4777_v49  ;;  %2105 = vmatprep.subr.bf16.mxu1 %v4779_v50  ;;  %v4870_v49 = vld [vmem:[#allocation2 + $0x320] ss:$16 sps:$4 sm:$0xff]   ;;  %v4873_v50 = vld [vmem:[#allocation2 + $0x328] ss:$16 sps:$4 sm:$0xff]  }
  0x59   :  { %1654 = vmatpush1.bf16.msra.mxu0 %v4781_v51  ;;  %2106 = vmatpush1.bf16.msra.mxu1 %v4782_v52  ;;  %v4881_v51 = vld [vmem:[#allocation2 + $0x344] ss:$16 sps:$4 sm:$0xff]   ;;  %v4884_v52 = vld [vmem:[#allocation2 + $0x34c] ss:$16 sps:$4 sm:$0xff]  }
  0x5a   :  { %1655 = vmatprep.subr.bf16.mxu0 %v4783_v53  ;;  %2107 = vmatprep.subr.bf16.mxu1 %v4785_v54  ;;  %v4878_v53 = vld [vmem:[%s6118_s0 + $0x118] ss:$28 sps:$4 sm:$0xff]   ;;  %v4879_v54 = vld [vmem:[#allocation2 + $0x340] ss:$16 sps:$4 sm:$0xff]  }
  0x5d   :  { %1656 = vmatpush1.bf16.msra.mxu0 %v4787_v55  ;;  %2108 = vmatpush1.bf16.msra.mxu1 %v4788_v56  ;;  %v4882_v55 = vld [vmem:[#allocation2 + $0x348] ss:$16 sps:$4 sm:$0xff]   ;;  %v4887_v56 = vld [vmem:[#allocation2 + $0x364] ss:$16 sps:$4 sm:$0xff]  }
  0x5e   :  { %1657 = vmatprep.subr.bf16.mxu0 %v4789_v57  ;;  %2109 = vmatprep.subr.bf16.mxu1 %v4791_v58  ;;  %v4890_v57 = vld [vmem:[#allocation2 + $0x36c] ss:$16 sps:$4 sm:$0xff]   ;;  %v4891_v58 = vld [vmem:[%s6118_s0 + $0x154] ss:$28 sps:$4 sm:$0xff]  }
  0x61   :  { %1658 = vmatpush1.bf16.msra.mxu0 %v4793_v59  ;;  %2110 = vmatpush1.bf16.msra.mxu1 %v4794_v60  ;;  %v4885_v59 = vld [vmem:[#allocation2 + $0x360] ss:$16 sps:$4 sm:$0xff]   ;;  %v4888_v60 = vld [vmem:[#allocation2 + $0x368] ss:$16 sps:$4 sm:$0xff]  }
  0x62   :  { %1659 = vmatprep.subr.bf16.mxu0 %v4795_v61  ;;  %2111 = vmatprep.subr.bf16.mxu1 %v4797_v62  ;;  %v4896_v61 = vld [vmem:[#allocation2 + $0x384] ss:$16 sps:$4 sm:$0xff]   ;;  %v4899_v62 = vld [vmem:[#allocation2 + $0x38c] ss:$16 sps:$4 sm:$0xff]  }
  0x65   :  { %1660 = vmatpush1.bf16.msra.mxu0 %v4799_v63  ;;  %2112 = vmatpush1.bf16.msra.mxu1 %v4800_v0  ;;  %v4893_v63 = vld [vmem:[%s6118_s0 + $0x150] ss:$28 sps:$4 sm:$0xff]  }
  0x66   :  { %1742 = vmatprep.subr.bf16.mxu0 %v4806_v1  ;;  %2194 = vmatprep.subr.bf16.mxu1 %v4809_v2  ;;  %v4894_v0 = vld [vmem:[#allocation2 + $0x380] ss:$16 sps:$4 sm:$0xff]   ;;  %v4897_v1 = vld [vmem:[#allocation2 + $0x388] ss:$16 sps:$4 sm:$0xff]   ;;  %v4902_v2 = vld [vmem:[#allocation2 + $0x3a4] ss:$16 sps:$4 sm:$0xff]  }
  0x68   :  { %1662 = vmatmul.mubr.bf16.vlgmr.msra.gmra.mrb[0].mxu0 %v4801_v3  ;;  %2114 = vmatmul.mubr.bf16.vlgmr.msra.gmra.mrb[0].mxu1 %v4801_v3  ;;  %v4905_v3 = vld [vmem:[#allocation2 + $0x3ac] ss:$16 sps:$4 sm:$0xff]  }
  0x69   :  { %1743 = vmatpush1.bf16.msra.mxu0 %v4804_v4  ;;  %2195 = vmatpush1.bf16.msra.mxu1 %v4807_v5  ;;  %v4906_v4 = vld [vmem:[%s6118_s0 + $0x18c] ss:$28 sps:$4 sm:$0xff]   ;;  %v4900_v5 = vld [vmem:[#allocation2 + $0x3a0] ss:$16 sps:$4 sm:$0xff]  }
  0x6a   :  { %1744 = vmatprep.subr.bf16.mxu0 %v4812_v6  ;;  %2196 = vmatprep.subr.bf16.mxu1 %v4815_v7  ;;  %v4903_v6 = vld [vmem:[#allocation2 + $0x3a8] ss:$16 sps:$4 sm:$0xff]   ;;  %v4911_v7 = vld [vmem:[#allocation2 + $0x3c4] ss:$16 sps:$4 sm:$0xff]  }
  0x6b   :  { %1671 = vmatprep.mubr.bf16.mxu0 %v4816_v8  ;;  %2123 = vmatprep.mubr.bf16.mxu1 %v4816_v8  ;;  %v4914_v8 = vld [vmem:[#allocation2 + $0x3cc] ss:$16 sps:$4 sm:$0xff]  }
  0x6d   :  { %1745 = vmatpush1.bf16.msra.mxu0 %v4810_v9  ;;  %2197 = vmatpush1.bf16.msra.mxu1 %v4813_v10  ;;  %v4908_v9 = vld [vmem:[%s6118_s0 + $0x188] ss:$28 sps:$4 sm:$0xff]   ;;  %v4909_v10 = vld [vmem:[#allocation2 + $0x3c0] ss:$16 sps:$4 sm:$0xff]  }
  0x6e   :  { %1746 = vmatprep.subr.bf16.mxu0 %v4821_v11  ;;  %2198 = vmatprep.subr.bf16.mxu1 %v4824_v12  ;;  %v4912_v11 = vld [vmem:[#allocation2 + $0x3c8] ss:$16 sps:$4 sm:$0xff]   ;;  %v4917_v12 = vld [vmem:[#allocation2 + $0x3e4] ss:$16 sps:$4 sm:$0xff]  }
  0x70   :  { %1672 = vmatmul.mubr.bf16.gmra.mrb[4].mxu0 %v4818_v13  ;;  %2124 = vmatmul.mubr.bf16.gmra.mrb[4].mxu1 %v4818_v13  ;;  %v4920_v13 = vld [vmem:[#allocation2 + $0x3ec] ss:$16 sps:$4 sm:$0xff]  }
  0x71   :  { %1747 = vmatpush1.bf16.msra.mxu0 %v4819_v14  ;;  %2199 = vmatpush1.bf16.msra.mxu1 %v4822_v15  ;;  %v4923_v14 = vld [vmem:[%s6118_s0 + $0xc] ss:$28 sps:$4 sm:$0xff]   ;;  %v4915_v15 = vld [vmem:[#allocation2 + $0x3e0] ss:$16 sps:$4 sm:$0xff]  }
  0x72   :  { %1748 = vmatprep.subr.bf16.mxu0 %v4827_v16  ;;  %2200 = vmatprep.subr.bf16.mxu1 %v4830_v17  ;;  %v4918_v16 = vld [vmem:[#allocation2 + $0x3e8] ss:$16 sps:$4 sm:$0xff]   ;;  %v4926_v17 = vld [vmem:[#allocation2 + $0x404] ss:$16 sps:$4 sm:$0xff]  }
  0x73   :  { %1681 = vmatprep.mubr.bf16.mxu0 %v4831_v18  ;;  %2133 = vmatprep.mubr.bf16.mxu1 %v4831_v18  ;;  %v4929_v18 = vld [vmem:[#allocation2 + $0x40c] ss:$16 sps:$4 sm:$0xff]  }
  0x75   :  { %1749 = vmatpush1.bf16.msra.mxu0 %v4825_v19  ;;  %2201 = vmatpush1.bf16.msra.mxu1 %v4828_v20  ;;  %v4921_v19 = vld [vmem:[%s6118_s0 + $0x8] ss:$28 sps:$4 sm:$0xff]   ;;  %v4924_v20 = vld [vmem:[#allocation2 + $0x400] ss:$16 sps:$4 sm:$0xff]  }
  0x76   :  { %1750 = vmatprep.subr.bf16.mxu0 %v4836_v21  ;;  %2202 = vmatprep.subr.bf16.mxu1 %v4839_v22  ;;  %v4927_v21 = vld [vmem:[#allocation2 + $0x408] ss:$16 sps:$4 sm:$0xff]   ;;  %v4932_v22 = vld [vmem:[#allocation2 + $0x424] ss:$16 sps:$4 sm:$0xff]  }
  0x78   :  { %1682 = vmatmul.mubr.bf16.gmra.mrb[8].mxu0 %v4833_v23  ;;  %2134 = vmatmul.mubr.bf16.gmra.mrb[8].mxu1 %v4833_v23  ;;  %v4935_v23 = vld [vmem:[#allocation2 + $0x42c] ss:$16 sps:$4 sm:$0xff]  }
  0x79   :  { %1751 = vmatpush1.bf16.msra.mxu0 %v4834_v24  ;;  %2203 = vmatpush1.bf16.msra.mxu1 %v4837_v25  ;;  %v4936_v24 = vld [vmem:[%s6118_s0 + $0x44] ss:$28 sps:$4 sm:$0xff]  }
  0x7a   :  { %1752 = vmatprep.subr.bf16.mxu0 %v4842_v26  ;;  %2204 = vmatprep.subr.bf16.mxu1 %v4845_v27  ;;  %v4930_v25 = vld [vmem:[#allocation2 + $0x420] ss:$16 sps:$4 sm:$0xff]   ;;  %v4933_v26 = vld [vmem:[#allocation2 + $0x428] ss:$16 sps:$4 sm:$0xff]   ;;  %v4941_v27 = vld [vmem:[#allocation2 + $0x444] ss:$16 sps:$4 sm:$0xff]  }
  0x7b   :  { %1691 = vmatprep.mubr.bf16.mxu0 %v4846_v28  ;;  %2143 = vmatprep.mubr.bf16.mxu1 %v4846_v28  ;;  %v4944_v28 = vld [vmem:[#allocation2 + $0x44c] ss:$16 sps:$4 sm:$0xff]  }
  0x7d   :  { %1753 = vmatpush1.bf16.msra.mxu0 %v4840_v29  ;;  %2205 = vmatpush1.bf16.msra.mxu1 %v4843_v30  ;;  %v4938_v29 = vld [vmem:[%s6118_s0 + $0x40] ss:$28 sps:$4 sm:$0xff]  }
  0x7e   :  { %1754 = vmatprep.subr.bf16.mxu0 %v4851_v31  ;;  %2206 = vmatprep.subr.bf16.mxu1 %v4854_v32  ;;  %v4939_v30 = vld [vmem:[#allocation2 + $0x440] ss:$16 sps:$4 sm:$0xff]   ;;  %v4942_v31 = vld [vmem:[#allocation2 + $0x448] ss:$16 sps:$4 sm:$0xff]   ;;  %v4947_v32 = vld [vmem:[#allocation2 + $0x464] ss:$16 sps:$4 sm:$0xff]  }
  0x80   :  { %1692 = vmatmul.mubr.bf16.gmra.mrb[12].mxu0 %v4848_v33  ;;  %2144 = vmatmul.mubr.bf16.gmra.mrb[12].mxu1 %v4848_v33  ;;  %v4950_v33 = vld [vmem:[#allocation2 + $0x46c] ss:$16 sps:$4 sm:$0xff]  }
  0x81   :  { %1755 = vmatpush1.bf16.msra.mxu0 %v4849_v34  ;;  %2207 = vmatpush1.bf16.msra.mxu1 %v4852_v35  ;;  %v4951_v34 = vld [vmem:[%s6118_s0 + $0x7c] ss:$28 sps:$4 sm:$0xff]   ;;  %v4945_v35 = vld [vmem:[#allocation2 + $0x460] ss:$16 sps:$4 sm:$0xff]  }
  0x82   :  { %1756 = vmatprep.subr.bf16.mxu0 %v4857_v36  ;;  %2208 = vmatprep.subr.bf16.mxu1 %v4860_v37  ;;  %v4948_v36 = vld [vmem:[#allocation2 + $0x468] ss:$16 sps:$4 sm:$0xff]   ;;  %v4956_v37 = vld [vmem:[#allocation2 + $0x484] ss:$16 sps:$4 sm:$0xff]  }
  0x83   :  { %1701 = vmatprep.mubr.bf16.mxu0 %v4861_v38  ;;  %2153 = vmatprep.mubr.bf16.mxu1 %v4861_v38  ;;  %v4959_v38 = vld [vmem:[#allocation2 + $0x48c] ss:$16 sps:$4 sm:$0xff]  }
  0x85   :  { %1757 = vmatpush1.bf16.msra.mxu0 %v4855_v39  ;;  %2209 = vmatpush1.bf16.msra.mxu1 %v4858_v40  ;;  %v4953_v39 = vld [vmem:[%s6118_s0 + $0x78] ss:$28 sps:$4 sm:$0xff]   ;;  %v4954_v40 = vld [vmem:[#allocation2 + $0x480] ss:$16 sps:$4 sm:$0xff]  }
  0x86   :  { %1758 = vmatprep.subr.bf16.mxu0 %v4866_v41  ;;  %2210 = vmatprep.subr.bf16.mxu1 %v4869_v42  ;;  %v4957_v41 = vld [vmem:[#allocation2 + $0x488] ss:$16 sps:$4 sm:$0xff]   ;;  %v4962_v42 = vld [vmem:[#allocation2 + $0x4a4] ss:$16 sps:$4 sm:$0xff]  }
  0x88   :  { %1702 = vmatmul.mubr.bf16.gmra.mrb[16].mxu0 %v4863_v43  ;;  %2154 = vmatmul.mubr.bf16.gmra.mrb[16].mxu1 %v4863_v43  ;;  %v4965_v43 = vld [vmem:[#allocation2 + $0x4ac] ss:$16 sps:$4 sm:$0xff]  }
  0x89   :  { %1759 = vmatpush1.bf16.msra.mxu0 %v4864_v44  ;;  %2211 = vmatpush1.bf16.msra.mxu1 %v4867_v45  ;;  %v4966_v44 = vld [vmem:[%s6118_s0 + $0xb4] ss:$28 sps:$4 sm:$0xff]  }
  0x8a   :  { %1760 = vmatprep.subr.bf16.mxu0 %v4872_v46  ;;  %2212 = vmatprep.subr.bf16.mxu1 %v4875_v47  ;;  %v4960_v45 = vld [vmem:[#allocation2 + $0x4a0] ss:$16 sps:$4 sm:$0xff]   ;;  %v4963_v46 = vld [vmem:[#allocation2 + $0x4a8] ss:$16 sps:$4 sm:$0xff]   ;;  %v4971_v47 = vld [vmem:[#allocation2 + $0x4c4] ss:$16 sps:$4 sm:$0xff]  }
  0x8b   :  { %1711 = vmatprep.mubr.bf16.mxu0 %v4876_v48  ;;  %2163 = vmatprep.mubr.bf16.mxu1 %v4876_v48  ;;  %v4974_v48 = vld [vmem:[#allocation2 + $0x4cc] ss:$16 sps:$4 sm:$0xff]  }
  0x8d   :  { %1761 = vmatpush1.bf16.msra.mxu0 %v4870_v49  ;;  %2213 = vmatpush1.bf16.msra.mxu1 %v4873_v50  ;;  %v4968_v49 = vld [vmem:[%s6118_s0 + $0xb0] ss:$28 sps:$4 sm:$0xff]  }
  0x8e   :  { %1762 = vmatprep.subr.bf16.mxu0 %v4881_v51  ;;  %2214 = vmatprep.subr.bf16.mxu1 %v4884_v52  ;;  %v4969_v50 = vld [vmem:[#allocation2 + $0x4c0] ss:$16 sps:$4 sm:$0xff]   ;;  %v4972_v51 = vld [vmem:[#allocation2 + $0x4c8] ss:$16 sps:$4 sm:$0xff]   ;;  %v4977_v52 = vld [vmem:[#allocation2 + $0x4e4] ss:$16 sps:$4 sm:$0xff]  }
  0x90   :  { %1712 = vmatmul.mubr.bf16.gmra.mrb[20].mxu0 %v4878_v53  ;;  %2164 = vmatmul.mubr.bf16.gmra.mrb[20].mxu1 %v4878_v53  ;;  %v4980_v53 = vld [vmem:[#allocation2 + $0x4ec] ss:$16 sps:$4 sm:$0xff]  }
  0x91   :  { %1763 = vmatpush1.bf16.msra.mxu0 %v4879_v54  ;;  %2215 = vmatpush1.bf16.msra.mxu1 %v4882_v55  ;;  %v4981_v54 = vld [vmem:[%s6118_s0 + $0xec] ss:$28 sps:$4 sm:$0xff]   ;;  %v4975_v55 = vld [vmem:[#allocation2 + $0x4e0] ss:$16 sps:$4 sm:$0xff]  }
  0x92   :  { %1764 = vmatprep.subr.bf16.mxu0 %v4887_v56  ;;  %2216 = vmatprep.subr.bf16.mxu1 %v4890_v57  ;;  %v4978_v56 = vld [vmem:[#allocation2 + $0x4e8] ss:$16 sps:$4 sm:$0xff]   ;;  %v4986_v57 = vld [vmem:[#allocation2 + $0x504] ss:$16 sps:$4 sm:$0xff]  }
  0x93   :  { %1721 = vmatprep.mubr.bf16.mxu0 %v4891_v58  ;;  %2173 = vmatprep.mubr.bf16.mxu1 %v4891_v58  ;;  %v4989_v58 = vld [vmem:[#allocation2 + $0x50c] ss:$16 sps:$4 sm:$0xff]  }
  0x95   :  { %1765 = vmatpush1.bf16.msra.mxu0 %v4885_v59  ;;  %2217 = vmatpush1.bf16.msra.mxu1 %v4888_v60  ;;  %v4983_v59 = vld [vmem:[%s6118_s0 + $0xe8] ss:$28 sps:$4 sm:$0xff]   ;;  %v4984_v60 = vld [vmem:[#allocation2 + $0x500] ss:$16 sps:$4 sm:$0xff]  }
  0x96   :  { %1766 = vmatprep.subr.bf16.mxu0 %v4896_v61  ;;  %2218 = vmatprep.subr.bf16.mxu1 %v4899_v62  ;;  %v4987_v61 = vld [vmem:[#allocation2 + $0x508] ss:$16 sps:$4 sm:$0xff]   ;;  %v4992_v62 = vld [vmem:[#allocation2 + $0x524] ss:$16 sps:$4 sm:$0xff]  }
  0x98   :  { %1722 = vmatmul.mubr.bf16.gmra.mrb[24].mxu0 %v4893_v63  ;;  %2174 = vmatmul.mubr.bf16.gmra.mrb[24].mxu1 %v4893_v63  ;;  %v4995_v63 = vld [vmem:[#allocation2 + $0x52c] ss:$16 sps:$4 sm:$0xff]  }
  0x99   :  { %1767 = vmatpush1.bf16.msra.mxu0 %v4894_v0  ;;  %2219 = vmatpush1.bf16.msra.mxu1 %v4897_v1  ;;  %v4990_v0 = vld [vmem:[#allocation2 + $0x520] ss:$16 sps:$4 sm:$0xff]  }
  0x9a   :  { %1768 = vmatprep.subr.bf16.mxu0 %v4902_v2  ;;  %2220 = vmatprep.subr.bf16.mxu1 %v4905_v3  ;;  %v4996_v1 = vld [vmem:[%s6118_s0 + $0x124] ss:$28 sps:$4 sm:$0xff]   ;;  %v4993_v2 = vld [vmem:[#allocation2 + $0x528] ss:$16 sps:$4 sm:$0xff]  }
  0x9b   :  { %1731 = vmatprep.mubr.bf16.mxu0 %v4906_v4  ;;  %2183 = vmatprep.mubr.bf16.mxu1 %v4906_v4  ;;  %v5001_v3 = vld [vmem:[#allocation2 + $0x544] ss:$16 sps:$4 sm:$0xff]   ;;  %v4998_v4 = vld [vmem:[%s6118_s0 + $0x120] ss:$28 sps:$4 sm:$0xff]  }
  0x9d   :  { %1769 = vmatpush1.bf16.msra.mxu0 %v4900_v5  ;;  %2221 = vmatpush1.bf16.msra.mxu1 %v4903_v6  ;;  %v5004_v5 = vld [vmem:[#allocation2 + $0x54c] ss:$16 sps:$4 sm:$0xff]   ;;  %v4999_v6 = vld [vmem:[#allocation2 + $0x540] ss:$16 sps:$4 sm:$0xff]  }
  0x9e   :  { %1770 = vmatprep.subr.bf16.mxu0 %v4911_v7  ;;  %2222 = vmatprep.subr.bf16.mxu1 %v4914_v8  ;;  %v5002_v7 = vld [vmem:[#allocation2 + $0x548] ss:$16 sps:$4 sm:$0xff]   ;;  %v5007_v8 = vld [vmem:[#allocation2 + $0x564] ss:$16 sps:$4 sm:$0xff]  }
  0xa0   :  { %1732 = vmatmul.mubr.bf16.gmra.mrb[28].mxu0 %v4908_v9  ;;  %2184 = vmatmul.mubr.bf16.gmra.mrb[28].mxu1 %v4908_v9  ;;  %v5010_v9 = vld [vmem:[#allocation2 + $0x56c] ss:$16 sps:$4 sm:$0xff]  }
  0xa1   :  { %1771 = vmatpush1.bf16.msra.mxu0 %v4909_v10  ;;  %2223 = vmatpush1.bf16.msra.mxu1 %v4912_v11  ;;  %v5011_v10 = vld [vmem:[%s6118_s0 + $0x15c] ss:$28 sps:$4 sm:$0xff]   ;;  %v5005_v11 = vld [vmem:[#allocation2 + $0x560] ss:$16 sps:$4 sm:$0xff]  }
  0xa2   :  { %1772 = vmatprep.subr.bf16.mxu0 %v4917_v12  ;;  %2224 = vmatprep.subr.bf16.mxu1 %v4920_v13  ;;  %v5008_v12 = vld [vmem:[#allocation2 + $0x568] ss:$16 sps:$4 sm:$0xff]   ;;  %v5016_v13 = vld [vmem:[#allocation2 + $0x584] ss:$16 sps:$4 sm:$0xff]  }
  0xa3   :  { %1774 = vmatprep.mubr.bf16.mxu0 %v4923_v14  ;;  %2226 = vmatprep.mubr.bf16.mxu1 %v4923_v14  ;;  %v5019_v14 = vld [vmem:[#allocation2 + $0x58c] ss:$16 sps:$4 sm:$0xff]  }
  0xa5   :  { %1773 = vmatpush1.bf16.msra.mxu0 %v4915_v15  ;;  %2225 = vmatpush1.bf16.msra.mxu1 %v4918_v16  ;;  %v5013_v15 = vld [vmem:[%s6118_s0 + $0x158] ss:$28 sps:$4 sm:$0xff]   ;;  %v5014_v16 = vld [vmem:[#allocation2 + $0x580] ss:$16 sps:$4 sm:$0xff]  }
  0xa6   :  { %1855 = vmatprep.subr.bf16.mxu0 %v4926_v17  ;;  %2307 = vmatprep.subr.bf16.mxu1 %v4929_v18  ;;  %v5017_v17 = vld [vmem:[#allocation2 + $0x588] ss:$16 sps:$4 sm:$0xff]   ;;  %v5022_v18 = vld [vmem:[#allocation2 + $0x5a4] ss:$16 sps:$4 sm:$0xff]  }
  0xa8   :  { %1775 = vmatmul.mubr.bf16.vlgmr.msra.gmra.mrb[0].mxu0 %v4921_v19  ;;  %2227 = vmatmul.mubr.bf16.vlgmr.msra.gmra.mrb[0].mxu1 %v4921_v19  ;;  %v5025_v19 = vld [vmem:[#allocation2 + $0x5ac] ss:$16 sps:$4 sm:$0xff]  }
  0xa9   :  { %1856 = vmatpush1.bf16.msra.mxu0 %v4924_v20  ;;  %2308 = vmatpush1.bf16.msra.mxu1 %v4927_v21  ;;  %v5026_v20 = vld [vmem:[%s6118_s0 + $0x194] ss:$28 sps:$4 sm:$0xff]  }
  0xaa   :  { %1857 = vmatprep.subr.bf16.mxu0 %v4932_v22  ;;  %2309 = vmatprep.subr.bf16.mxu1 %v4935_v23  ;;  %v5020_v21 = vld [vmem:[#allocation2 + $0x5a0] ss:$16 sps:$4 sm:$0xff]   ;;  %v5023_v22 = vld [vmem:[#allocation2 + $0x5a8] ss:$16 sps:$4 sm:$0xff]   ;;  %v5031_v23 = vld [vmem:[#allocation2 + $0x5c4] ss:$16 sps:$4 sm:$0xff]  }
  0xab   :  { %1784 = vmatprep.mubr.bf16.mxu0 %v4936_v24  ;;  %2236 = vmatprep.mubr.bf16.mxu1 %v4936_v24  ;;  %v5034_v24 = vld [vmem:[#allocation2 + $0x5cc] ss:$16 sps:$4 sm:$0xff]  }
  0xad   :  { %1858 = vmatpush1.bf16.msra.mxu0 %v4930_v25  ;;  %2310 = vmatpush1.bf16.msra.mxu1 %v4933_v26  ;;  %v5028_v25 = vld [vmem:[%s6118_s0 + $0x190] ss:$28 sps:$4 sm:$0xff]  }
  0xae   :  { %1859 = vmatprep.subr.bf16.mxu0 %v4941_v27  ;;  %2311 = vmatprep.subr.bf16.mxu1 %v4944_v28  ;;  %v5029_v26 = vld [vmem:[#allocation2 + $0x5c0] ss:$16 sps:$4 sm:$0xff]   ;;  %v5032_v27 = vld [vmem:[#allocation2 + $0x5c8] ss:$16 sps:$4 sm:$0xff]   ;;  %v5037_v28 = vld [vmem:[#allocation2 + $0x5e4] ss:$16 sps:$4 sm:$0xff]  }
  0xb0   :  { %1785 = vmatmul.mubr.bf16.gmra.mrb[4].mxu0 %v4938_v29  ;;  %2237 = vmatmul.mubr.bf16.gmra.mrb[4].mxu1 %v4938_v29  ;;  %v5040_v29 = vld [vmem:[#allocation2 + $0x5ec] ss:$16 sps:$4 sm:$0xff]  }
  0xb1   :  { %1860 = vmatpush1.bf16.msra.mxu0 %v4939_v30  ;;  %2312 = vmatpush1.bf16.msra.mxu1 %v4942_v31  ;;  %v5043_v30 = vld [vmem:[%s6118_s0 + $0x14] ss:$28 sps:$4 sm:$0xff]  }
  0xb2   :  { %1861 = vmatprep.subr.bf16.mxu0 %v4947_v32  ;;  %2313 = vmatprep.subr.bf16.mxu1 %v4950_v33  ;;  %v5035_v31 = vld [vmem:[#allocation2 + $0x5e0] ss:$16 sps:$4 sm:$0xff]   ;;  %v5038_v32 = vld [vmem:[#allocation2 + $0x5e8] ss:$16 sps:$4 sm:$0xff]   ;;  %v5046_v33 = vld [vmem:[#allocation2 + $0x604] ss:$16 sps:$4 sm:$0xff]  }
  0xb3   :  { %1794 = vmatprep.mubr.bf16.mxu0 %v4951_v34  ;;  %2246 = vmatprep.mubr.bf16.mxu1 %v4951_v34  ;;  %v5070_v34 = vld [vmem:[#allocation2 + $0x60c] ss:$16 sps:$4 sm:$0xff]  }
  0xb5   :  { %1862 = vmatpush1.bf16.msra.mxu0 %v4945_v35  ;;  %2314 = vmatpush1.bf16.msra.mxu1 %v4948_v36  ;;  %v5041_v35 = vld [vmem:[%s6118_s0 + $0x10] ss:$28 sps:$4 sm:$0xff]  }
  0xb6   :  { %1863 = vmatprep.subr.bf16.mxu0 %v4956_v37  ;;  %2315 = vmatprep.subr.bf16.mxu1 %v4959_v38  ;;  %v5044_v36 = vld [vmem:[#allocation2 + $0x600] ss:$16 sps:$4 sm:$0xff]   ;;  %v5047_v37 = vld [vmem:[%s6118_s0 + $0x4c] ss:$28 sps:$4 sm:$0xff]  }
  0xb7   :  { %v5068_v38 = vld [vmem:[#allocation2 + $0x608] ss:$16 sps:$4 sm:$0xff]  }
  0xb8   :  { %1795 = vmatmul.mubr.bf16.gmra.mrb[8].mxu0 %v4953_v39  ;;  %2247 = vmatmul.mubr.bf16.gmra.mrb[8].mxu1 %v4953_v39  ;;  %v5081_v39 = vld [vmem:[%s6121_s3 + $0x4] ss:$8 sps:$4 sm:$0xff]  }
  0xb9   :  { %1864 = vmatpush1.bf16.msra.mxu0 %v4954_v40  ;;  %2316 = vmatpush1.bf16.msra.mxu1 %v4957_v41  ;;  %v5049_v40 = vld [vmem:[%s6118_s0 + $0x48] ss:$28 sps:$4 sm:$0xff]  }
  0xba   :  { %1865 = vmatprep.subr.bf16.mxu0 %v4962_v42  ;;  %2317 = vmatprep.subr.bf16.mxu1 %v4965_v43  ;;  %v5050_v41 = vld [vmem:[%s6118_s0 + $0x84] ss:$28 sps:$4 sm:$0xff]   ;;  %v5053_v43 = vld [vmem:[%s6118_s0 + $0xbc] ss:$28 sps:$4 sm:$0xff]  }
  0xbb   :  { %1804 = vmatprep.mubr.bf16.mxu0 %v4966_v44  ;;  %2256 = vmatprep.mubr.bf16.mxu1 %v4966_v44  ;;  %v5052_v42 = vld [vmem:[%s6118_s0 + $0x80] ss:$28 sps:$4 sm:$0xff]   ;;  %v5055_v44 = vld [vmem:[%s6118_s0 + $0xb8] ss:$28 sps:$4 sm:$0xff]  }
  0xbd   :  { %1866 = vmatpush1.bf16.msra.mxu0 %v4960_v45  ;;  %2318 = vmatpush1.bf16.msra.mxu1 %v4963_v46  ;;  %v5056_v45 = vld [vmem:[%s6118_s0 + $0xf4] ss:$28 sps:$4 sm:$0xff]  }
  0xbe   :  { %1867 = vmatprep.subr.bf16.mxu0 %v4971_v47  ;;  %2319 = vmatprep.subr.bf16.mxu1 %v4974_v48  ;;  %v5058_v46 = vld [vmem:[%s6118_s0 + $0xf0] ss:$28 sps:$4 sm:$0xff]   ;;  %v5061_v48 = vld [vmem:[%s6118_s0 + $0x128] ss:$28 sps:$4 sm:$0xff]  }
  0xbf   :  { %v5059_v47 = vld [vmem:[%s6118_s0 + $0x12c] ss:$28 sps:$4 sm:$0xff]  }
  0xc0   :  { %1805 = vmatmul.mubr.bf16.gmra.mrb[12].mxu0 %v4968_v49  ;;  %2257 = vmatmul.mubr.bf16.gmra.mrb[12].mxu1 %v4968_v49  ;;  %v5062_v49 = vld [vmem:[%s6118_s0 + $0x164] ss:$28 sps:$4 sm:$0xff]  }
  0xc1   :  { %1868 = vmatpush1.bf16.msra.mxu0 %v4969_v50  ;;  %2320 = vmatpush1.bf16.msra.mxu1 %v4972_v51  ;;  %v5064_v50 = vld [vmem:[%s6118_s0 + $0x160] ss:$28 sps:$4 sm:$0xff]  }
  0xc2   :  { %1869 = vmatprep.subr.bf16.mxu0 %v4977_v52  ;;  %2321 = vmatprep.subr.bf16.mxu1 %v4980_v53  ;;  %v5065_v51 = vld [vmem:[%s6118_s0 + $0x19c] ss:$28 sps:$4 sm:$0xff]   ;;  %v5317_v53 = vmov 0  }
  0xc3   :  { %1814 = vmatprep.mubr.bf16.mxu0 %v4981_v54  ;;  %2266 = vmatprep.mubr.bf16.mxu1 %v4981_v54  ;;  %v5067_v52 = vld [vmem:[%s6118_s0 + $0x198] ss:$28 sps:$4 sm:$0xff]  }
  0xc4   :  { %v5071_v54 = vld [vmem:[%s6118_s0 + $0x18] ss:$28 sps:$4 sm:$0xff]  }
  0xc5   :  { %1870 = vmatpush1.bf16.msra.mxu0 %v4975_v55  ;;  %2322 = vmatpush1.bf16.msra.mxu1 %v4978_v56  ;;  %v5079_v55 = vld [vmem:[%s6121_s3] ss:$8 sps:$4 sm:$0xff]   ;;  %v5084_v56 = vld [vmem:[%s6121_s3 + $0x14] ss:$8 sps:$4 sm:$0xff]  }
  0xc6   :  { %1871 = vmatprep.subr.bf16.mxu0 %v4986_v57  ;;  %2323 = vmatprep.subr.bf16.mxu1 %v4989_v58  ;;  %v5082_v57 = vld [vmem:[%s6121_s3 + $0x10] ss:$8 sps:$4 sm:$0xff]   ;;  %v5087_v58 = vld [vmem:[%s6121_s3 + $0x24] ss:$8 sps:$4 sm:$0xff]  }
  0xc8   :  { %1815 = vmatmul.mubr.bf16.gmra.mrb[16].mxu0 %v4983_v59  ;;  %2267 = vmatmul.mubr.bf16.gmra.mrb[16].mxu1 %v4983_v59  ;;  %v5072_v59 = vld [vmem:[%s6118_s0 + $0x50] ss:$28 sps:$4 sm:$0xff]  }
  0xc9   :  { %1872 = vmatpush1.bf16.msra.mxu0 %v4984_v60  ;;  %2324 = vmatpush1.bf16.msra.mxu1 %v4987_v61  ;;  %v5085_v60 = vld [vmem:[%s6121_s3 + $0x20] ss:$8 sps:$4 sm:$0xff]   ;;  %v5090_v61 = vld [vmem:[%s6121_s3 + $0x34] ss:$8 sps:$4 sm:$0xff]  }
  0xca   :  { %1873 = vmatprep.subr.bf16.mxu0 %v4992_v62  ;;  %2325 = vmatprep.subr.bf16.mxu1 %v4995_v63  ;;  %v5088_v62 = vld [vmem:[%s6121_s3 + $0x30] ss:$8 sps:$4 sm:$0xff]   ;;  %v5093_v63 = vld [vmem:[%s6121_s3 + $0x44] ss:$8 sps:$4 sm:$0xff]  }
  0xcb   :  { %1824 = vmatprep.mubr.bf16.mxu0 %v4996_v1  ;;  %2276 = vmatprep.mubr.bf16.mxu1 %v4996_v1  ;;  %v5091_v1 = vld [vmem:[%s6121_s3 + $0x40] ss:$8 sps:$4 sm:$0xff]  }
  0xcd   :  { %1874 = vmatpush1.bf16.msra.mxu0 %v4990_v0  ;;  %2326 = vmatpush1.bf16.msra.mxu1 %v4993_v2  ;;  %v5073_v0 = vld [vmem:[%s6118_s0 + $0x88] ss:$28 sps:$4 sm:$0xff]   ;;  %v5096_v2 = vld [vmem:[%s6121_s3 + $0x54] ss:$8 sps:$4 sm:$0xff]  }
  0xce   :  { %1875 = vmatprep.subr.bf16.mxu0 %v5001_v3  ;;  %2327 = vmatprep.subr.bf16.mxu1 %v5004_v5  ;;  %v5094_v3 = vld [vmem:[%s6121_s3 + $0x50] ss:$8 sps:$4 sm:$0xff]   ;;  %v5074_v5 = vld [vmem:[%s6118_s0 + $0xc0] ss:$28 sps:$4 sm:$0xff]  }
  0xd0   :  { %1825 = vmatmul.mubr.bf16.gmra.mrb[20].mxu0 %v4998_v4  ;;  %2277 = vmatmul.mubr.bf16.gmra.mrb[20].mxu1 %v4998_v4  ;;  %v5099_v4 = vld [vmem:[%s6121_s3 + $0x64] ss:$8 sps:$4 sm:$0xff]  }
  0xd1   :  { %1876 = vmatpush1.bf16.msra.mxu0 %v4999_v6  ;;  %2328 = vmatpush1.bf16.msra.mxu1 %v5002_v7  ;;  %v5097_v6 = vld [vmem:[%s6121_s3 + $0x60] ss:$8 sps:$4 sm:$0xff]   ;;  %v5102_v7 = vld [vmem:[%s6121_s3 + $0x74] ss:$8 sps:$4 sm:$0xff]  }
  0xd2   :  { %1877 = vmatprep.subr.bf16.mxu0 %v5007_v8  ;;  %2329 = vmatprep.subr.bf16.mxu1 %v5010_v9  ;;  %v5100_v8 = vld [vmem:[%s6121_s3 + $0x70] ss:$8 sps:$4 sm:$0xff]   ;;  %v5105_v9 = vld [vmem:[%s6121_s3 + $0x84] ss:$8 sps:$4 sm:$0xff]  }
  0xd3   :  { %1834 = vmatprep.mubr.bf16.mxu0 %v5011_v10  ;;  %2286 = vmatprep.mubr.bf16.mxu1 %v5011_v10  ;;  %v5075_v10 = vld [vmem:[%s6118_s0 + $0xf8] ss:$28 sps:$4 sm:$0xff]  }
  0xd5   :  { %1878 = vmatpush1.bf16.msra.mxu0 %v5005_v11  ;;  %2330 = vmatpush1.bf16.msra.mxu1 %v5008_v12  ;;  %v5103_v11 = vld [vmem:[%s6121_s3 + $0x80] ss:$8 sps:$4 sm:$0xff]   ;;  %v5108_v12 = vld [vmem:[%s6121_s3 + $0x94] ss:$8 sps:$4 sm:$0xff]  }
  0xd6   :  { %1879 = vmatprep.subr.bf16.mxu0 %v5016_v13  ;;  %2331 = vmatprep.subr.bf16.mxu1 %v5019_v14  ;;  %v5106_v13 = vld [vmem:[%s6121_s3 + $0x90] ss:$8 sps:$4 sm:$0xff]   ;;  %v5111_v14 = vld [vmem:[%s6121_s3 + $0xa4] ss:$8 sps:$4 sm:$0xff]  }
  0xd8   :  { %1835 = vmatmul.mubr.bf16.gmra.mrb[24].mxu0 %v5013_v15  ;;  %2287 = vmatmul.mubr.bf16.gmra.mrb[24].mxu1 %v5013_v15  ;;  %v5076_v15 = vld [vmem:[%s6118_s0 + $0x130] ss:$28 sps:$4 sm:$0xff]  }
  0xd9   :  { %1880 = vmatpush1.bf16.msra.mxu0 %v5014_v16  ;;  %2332 = vmatpush1.bf16.msra.mxu1 %v5017_v17  ;;  %v5109_v16 = vld [vmem:[%s6121_s3 + $0xa0] ss:$8 sps:$4 sm:$0xff]   ;;  %v5114_v17 = vld [vmem:[%s6121_s3 + $0xb4] ss:$8 sps:$4 sm:$0xff]  }
  0xda   :  { %1881 = vmatprep.subr.bf16.mxu0 %v5022_v18  ;;  %2333 = vmatprep.subr.bf16.mxu1 %v5025_v19  ;;  %v5112_v18 = vld [vmem:[%s6121_s3 + $0xb0] ss:$8 sps:$4 sm:$0xff]   ;;  %v5117_v19 = vld [vmem:[%s6121_s3 + $0xc4] ss:$8 sps:$4 sm:$0xff]  }
  0xdb   :  { %1844 = vmatprep.mubr.bf16.mxu0 %v5026_v20  ;;  %2296 = vmatprep.mubr.bf16.mxu1 %v5026_v20  ;;  %v5077_v20 = vld [vmem:[%s6118_s0 + $0x168] ss:$28 sps:$4 sm:$0xff]  }
  0xdd   :  { %1882 = vmatpush1.bf16.msra.mxu0 %v5020_v21  ;;  %2334 = vmatpush1.bf16.msra.mxu1 %v5023_v22  ;;  %v5115_v21 = vld [vmem:[%s6121_s3 + $0xc0] ss:$8 sps:$4 sm:$0xff]   ;;  %v5120_v22 = vld [vmem:[%s6121_s3 + $0xd4] ss:$8 sps:$4 sm:$0xff]  }
  0xde   :  { %1883 = vmatprep.subr.bf16.mxu0 %v5031_v23  ;;  %2335 = vmatprep.subr.bf16.mxu1 %v5034_v24  ;;  %v5118_v23 = vld [vmem:[%s6121_s3 + $0xd0] ss:$8 sps:$4 sm:$0xff]   ;;  %v5078_v24 = vld [vmem:[%s6118_s0 + $0x1a0] ss:$28 sps:$4 sm:$0xff]  }
  0xe0   :  { %1845 = vmatmul.mubr.bf16.gmra.mrb[28].mxu0 %v5028_v25  ;;  %2297 = vmatmul.mubr.bf16.gmra.mrb[28].mxu1 %v5028_v25  ;;  %v5123_v25 = vld [vmem:[%s6121_s3 + $0xe4] ss:$8 sps:$4 sm:$0xff]  }
  0xe1   :  { %1884 = vmatpush1.bf16.msra.mxu0 %v5029_v26  ;;  %2336 = vmatpush1.bf16.msra.mxu1 %v5032_v27  ;;  %v5121_v26 = vld [vmem:[%s6121_s3 + $0xe0] ss:$8 sps:$4 sm:$0xff]   ;;  %v5126_v27 = vld [vmem:[%s6121_s3 + $0xf4] ss:$8 sps:$4 sm:$0xff]  }
  0xe2   :  { %1885 = vmatprep.subr.bf16.mxu0 %v5037_v28  ;;  %2337 = vmatprep.subr.bf16.mxu1 %v5040_v29  ;;  %v5124_v28 = vld [vmem:[%s6121_s3 + $0xf0] ss:$8 sps:$4 sm:$0xff]   ;;  %v5129_v29 = vld [vmem:[%s6121_s3 + $0x104] ss:$8 sps:$4 sm:$0xff]  }
  0xe3   :  { %1887 = vmatprep.mubr.bf16.mxu0 %v5043_v30  ;;  %2339 = vmatprep.mubr.bf16.mxu1 %v5043_v30  ;;  %v324_v30 = vlaneseq }
  0xe5   :  { %1886 = vmatpush1.bf16.msra.mxu0 %v5035_v31  ;;  %2338 = vmatpush1.bf16.msra.mxu1 %v5038_v32  ;;  %v325_v31 = vshrl.u32 %v324_v30, 7  ;;  %v5186_v30 = vld [vmem:[%s6123_s5 + $0x34] ss:$8 sps:$4 sm:$0xff]  }
  0xe6   :  { %1968 = vmatprep.subr.bf16.mxu0 %v5046_v33  ;;  %2420 = vmatprep.subr.bf16.mxu1 %v5070_v34  ;;  %v322_v34 = vld [vmem:[%s6120_s2] sm:$0xf] }
  0xe7   :  { %v5694_v32 = vsub.s32 0, %v325_v31  ;;  %v334_v33 = vsub.s32 2, %v325_v31 }
  0xe8   :  { %1888 = vmatmul.mubr.bf16.vlgmr.msra.gmra.mrb[0].mxu0 %v5041_v35  ;;  %2340 = vmatmul.mubr.bf16.vlgmr.msra.gmra.mrb[0].mxu1 %v5041_v35  ;;  %v5699_v35 = vsub.s32 1, %v325_v31 }
  0xe9   :  { %1969 = vmatpush1.bf16.msra.mxu0 %v5044_v36  ;;  %1897 = vmatprep.mubr.bf16.mxu0 %v5047_v37  ;;  %v338_v36 = vsub.s32 3, %v325_v31 }
  0xea   :  { %2349 = vmatprep.mubr.bf16.mxu1 %v5047_v37  ;;  %2421 = vmatpush1.bf16.msra.mxu1 %v5068_v38  ;;  %v5702_v37 = vrot.slane %v322_v34, %v5694_v32  ;;  %v5704_v38 = vrot.slane %v322_v34, %v334_v33 }
  0xeb   :  { %3025 = vmatprep.subr.bf16.mxu0 %v5081_v39  ;;  %v5707_v39 = vrot.slane %v322_v34, %v5699_v35 }
  0xf0   :  { %1898 = vmatmul.mubr.bf16.gmra.mrb[4].mxu0 %v5049_v40  ;;  %2350 = vmatmul.mubr.bf16.gmra.mrb[4].mxu1 %v5049_v40  ;;  %v5709_v40 = vrot.slane %v322_v34, %v338_v36 }
  0xf1   :  { %1907 = vmatprep.mubr.bf16.mxu0 %v5050_v41  ;;  %2359 = vmatprep.mubr.bf16.mxu1 %v5050_v41 }
  0xf8   :  { %1908 = vmatmul.mubr.bf16.gmra.mrb[8].mxu0 %v5052_v42  ;;  %2360 = vmatmul.mubr.bf16.gmra.mrb[8].mxu1 %v5052_v42 }
  0xf9   :  { %1917 = vmatprep.mubr.bf16.mxu0 %v5053_v43  ;;  %2369 = vmatprep.mubr.bf16.mxu1 %v5053_v43 }
 0x100   :  { %1918 = vmatmul.mubr.bf16.gmra.mrb[12].mxu0 %v5055_v44  ;;  %2370 = vmatmul.mubr.bf16.gmra.mrb[12].mxu1 %v5055_v44 }
 0x101   :  { %1927 = vmatprep.mubr.bf16.mxu0 %v5056_v45  ;;  %2379 = vmatprep.mubr.bf16.mxu1 %v5056_v45 }
 0x108   :  { %1928 = vmatmul.mubr.bf16.gmra.mrb[16].mxu0 %v5058_v46  ;;  %2380 = vmatmul.mubr.bf16.gmra.mrb[16].mxu1 %v5058_v46 }
 0x109   :  { %1937 = vmatprep.mubr.bf16.mxu0 %v5059_v47  ;;  %2389 = vmatprep.mubr.bf16.mxu1 %v5059_v47 }
 0x110   :  { %1938 = vmatmul.mubr.bf16.gmra.mrb[20].mxu0 %v5061_v48  ;;  %2390 = vmatmul.mubr.bf16.gmra.mrb[20].mxu1 %v5061_v48 }
 0x111   :  { %1947 = vmatprep.mubr.bf16.mxu0 %v5062_v49  ;;  %2399 = vmatprep.mubr.bf16.mxu1 %v5062_v49 }
 0x118   :  { %1948 = vmatmul.mubr.bf16.gmra.mrb[24].mxu0 %v5064_v50  ;;  %2400 = vmatmul.mubr.bf16.gmra.mrb[24].mxu1 %v5064_v50 }
 0x119   :  { %1957 = vmatprep.mubr.bf16.mxu0 %v5065_v51  ;;  %2409 = vmatprep.mubr.bf16.mxu1 %v5065_v51 }
 0x120   :  { %1958 = vmatmul.mubr.bf16.gmra.mrb[28].mxu0 %v5067_v52  ;;  %2410 = vmatmul.mubr.bf16.gmra.mrb[28].mxu1 %v5067_v52 }
 0x121   :  { %2000 = vmatprep.mubr.bf16.mxu0 %v5317_v53  ;;  %2452 = vmatprep.mubr.bf16.mxu1 %v5317_v53 }
 0x128   :  { %4182 = vmatmul.mubr.msk.bf16.vlgmr.msra.gmra.mrb[0].mxu0 %vm1604_vm0, %v5071_v54  ;;  %4190 = vmatmul.mubr.msk.bf16.vlgmr.msra.gmra.mrb[0].mxu1 %vm1604_vm0, %v5071_v54 }
 0x129   :  { %2010 = vmatprep.mubr.bf16.mxu0 %v5317_v53  ;;  %2462 = vmatprep.mubr.bf16.mxu1 %v5317_v53 }
 0x12a   :  { %3026 = vmatpush1.bf16.msra.mxu0 %v5079_v55  ;;  %v5175_v55 = vld [vmem:[%s6123_s5] ss:$8 sps:$4 sm:$0xff]  }
 0x12b   :  { %3027 = vmatprep.subr.bf16.mxu0 %v5084_v56 }
 0x12e   :  { %3028 = vmatpush1.bf16.msra.mxu0 %v5082_v57 }
 0x12f   :  { %3029 = vmatprep.subr.bf16.mxu0 %v5087_v58  ;;  %v5177_v58 = vld [vmem:[%s6123_s5 + $0x4] ss:$8 sps:$4 sm:$0xff]  }
 0x130   :  { %4183 = vmatmul.mubr.msk.bf16.gmra.mrb[4].mxu0 %vm1604_vm0, %v5072_v59  ;;  %4191 = vmatmul.mubr.msk.bf16.gmra.mrb[4].mxu1 %vm1604_vm0, %v5072_v59 }
 0x131   :  { %2020 = vmatprep.mubr.bf16.mxu0 %v5317_v53  ;;  %2472 = vmatprep.mubr.bf16.mxu1 %v5317_v53 }
 0x132   :  { %3030 = vmatpush1.bf16.msra.mxu0 %v5085_v60  ;;  %3503 = vmatprep.subr.bf16.mxu1 %v5177_v58 }
 0x133   :  { %3031 = vmatprep.subr.bf16.mxu0 %v5090_v61  ;;  %3504 = vmatpush1.bf16.msra.mxu1 %v5175_v55 }
 0x136   :  { %3032 = vmatpush1.bf16.msra.mxu0 %v5088_v62 }
 0x137   :  { %3033 = vmatprep.subr.bf16.mxu0 %v5093_v63  ;;  %v5180_v63 = vld [vmem:[%s6123_s5 + $0x14] ss:$8 sps:$4 sm:$0xff]  }
 0x138   :  { %4184 = vmatmul.mubr.msk.bf16.gmra.mrb[8].mxu0 %vm1604_vm0, %v5073_v0  ;;  %4192 = vmatmul.mubr.msk.bf16.gmra.mrb[8].mxu1 %vm1604_vm0, %v5073_v0 }
 0x139   :  { %2030 = vmatprep.mubr.bf16.mxu0 %v5317_v53  ;;  %2482 = vmatprep.mubr.bf16.mxu1 %v5317_v53 }
 0x13a   :  { %3034 = vmatpush1.bf16.msra.mxu0 %v5091_v1  ;;  %3505 = vmatprep.subr.bf16.mxu1 %v5180_v63 }
 0x13b   :  { %3035 = vmatprep.subr.bf16.mxu0 %v5096_v2 }
 0x13e   :  { %3036 = vmatpush1.bf16.msra.mxu0 %v5094_v3 }
 0x13f   :  { %3037 = vmatprep.subr.bf16.mxu0 %v5099_v4 }
 0x140   :  { %4185 = vmatmul.mubr.msk.bf16.gmra.mrb[12].mxu0 %vm1604_vm0, %v5074_v5  ;;  %4193 = vmatmul.mubr.msk.bf16.gmra.mrb[12].mxu1 %vm1604_vm0, %v5074_v5 }
 0x141   :  { %2040 = vmatprep.mubr.bf16.mxu0 %v5317_v53  ;;  %2492 = vmatprep.mubr.bf16.mxu1 %v5317_v53 }
 0x142   :  { %3038 = vmatpush1.bf16.msra.mxu0 %v5097_v6  ;;  %v5178_v6 = vld [vmem:[%s6123_s5 + $0x10] ss:$8 sps:$4 sm:$0xff]  }
 0x143   :  { %3039 = vmatprep.subr.bf16.mxu0 %v5102_v7  ;;  %3506 = vmatpush1.bf16.msra.mxu1 %v5178_v6 }
 0x146   :  { %3040 = vmatpush1.bf16.msra.mxu0 %v5100_v8 }
 0x147   :  { %3041 = vmatprep.subr.bf16.mxu0 %v5105_v9 }
 0x148   :  { %4186 = vmatmul.mubr.msk.bf16.gmra.mrb[16].mxu0 %vm1604_vm0, %v5075_v10  ;;  %4194 = vmatmul.mubr.msk.bf16.gmra.mrb[16].mxu1 %vm1604_vm0, %v5075_v10 }
 0x149   :  { %2050 = vmatprep.mubr.bf16.mxu0 %v5317_v53  ;;  %2502 = vmatprep.mubr.bf16.mxu1 %v5317_v53 }
 0x14a   :  { %3042 = vmatpush1.bf16.msra.mxu0 %v5103_v11  ;;  %v5127_v11 = vld [vmem:[%s6121_s3 + $0x100] ss:$8 sps:$4 sm:$0xff]  }
 0x14b   :  { %3043 = vmatprep.subr.bf16.mxu0 %v5108_v12  ;;  %v5183_v12 = vld [vmem:[%s6123_s5 + $0x24] ss:$8 sps:$4 sm:$0xff]  }
 0x14c   :  { %3507 = vmatprep.subr.bf16.mxu1 %v5183_v12 }
 0x14e   :  { %3044 = vmatpush1.bf16.msra.mxu0 %v5106_v13 }
 0x14f   :  { %3045 = vmatprep.subr.bf16.mxu0 %v5111_v14 }
 0x150   :  { %4187 = vmatmul.mubr.msk.bf16.gmra.mrb[20].mxu0 %vm1604_vm0, %v5076_v15  ;;  %4195 = vmatmul.mubr.msk.bf16.gmra.mrb[20].mxu1 %vm1604_vm0, %v5076_v15 }
 0x151   :  { %2060 = vmatprep.mubr.bf16.mxu0 %v5317_v53  ;;  %2512 = vmatprep.mubr.bf16.mxu1 %v5317_v53 }
 0x152   :  { %3046 = vmatpush1.bf16.msra.mxu0 %v5109_v16 }
 0x153   :  { %3047 = vmatprep.subr.bf16.mxu0 %v5114_v17  ;;  %v5132_v17 = vld [vmem:[%s6121_s3 + $0x114] ss:$8 sps:$4 sm:$0xff]  }
 0x156   :  { %3048 = vmatpush1.bf16.msra.mxu0 %v5112_v18 }
 0x157   :  { %3049 = vmatprep.subr.bf16.mxu0 %v5117_v19 }
 0x158   :  { %4188 = vmatmul.mubr.msk.bf16.gmra.mrb[24].mxu0 %vm1604_vm0, %v5077_v20  ;;  %4196 = vmatmul.mubr.msk.bf16.gmra.mrb[24].mxu1 %vm1604_vm0, %v5077_v20 }
 0x159   :  { %2070 = vmatprep.mubr.bf16.mxu0 %v5317_v53  ;;  %2522 = vmatprep.mubr.bf16.mxu1 %v5317_v53 }
 0x15a   :  { %3050 = vmatpush1.bf16.msra.mxu0 %v5115_v21 }
 0x15b   :  { %3051 = vmatprep.subr.bf16.mxu0 %v5120_v22 }
 0x15e   :  { %3052 = vmatpush1.bf16.msra.mxu0 %v5118_v23 }
 0x15f   :  { %3053 = vmatprep.subr.bf16.mxu0 %v5123_v25 }
 0x160   :  { %4189 = vmatmul.mubr.msk.bf16.gmra.mrb[28].mxu0 %vm1604_vm0, %v5078_v24  ;;  %4197 = vmatmul.mubr.msk.bf16.gmra.mrb[28].mxu1 %vm1604_vm0, %v5078_v24 }
 0x162   :  { %3054 = vmatpush1.bf16.msra.mxu0 %v5121_v26  ;;  %v5181_v26 = vld [vmem:[%s6123_s5 + $0x20] ss:$8 sps:$4 sm:$0xff]  }
 0x163   :  { %3055 = vmatprep.subr.bf16.mxu0 %v5126_v27  ;;  %3508 = vmatpush1.bf16.msra.mxu1 %v5181_v26 }
 0x164   :  { %3509 = vmatprep.subr.bf16.mxu1 %v5186_v30 }
 0x166   :  { %3056 = vmatpush1.bf16.msra.mxu0 %v5124_v28 }
 0x167   :  { %3138 = vmatprep.subr.bf16.mxu0 %v5129_v29  ;;  %v5130_v29 = vld [vmem:[%s6121_s3 + $0x110] ss:$8 sps:$4 sm:$0xff]  }
 0x1fb   :  { %v2002_v41 = vpop.f32.mrb[0].mxu0  ;;  %v2454_v42 = vpop.f32.mrb[0].mxu1 }
 0x1fc   :  { %v4375_v43 = vadd.f32 %v2002_v41, %v5702_v37  ;;  %v4407_v44 = vadd.f32 %v2454_v42, %v5704_v38  ;;  %v2004_v45 = vpop.f32.mrb[1].mxu0  ;;  %v2456_v46 = vpop.f32.mrb[1].mxu1  ;;  %v5135_v41 = vld [vmem:[%s6121_s3 + $0x124] ss:$8 sps:$4 sm:$0xff]  }
 0x1fd   :  { %v4376_v47 = vadd.f32 %v2004_v45, %v5707_v39  ;;  %v4408_v48 = vadd.f32 %v2456_v46, %v5709_v40  ;;  %v2006_v49 = vpop.f32.mrb[2].mxu0  ;;  %v2458_v50 = vpop.f32.mrb[2].mxu1 }
 0x1fe   :  { %v4377_v51 = vadd.f32 %v2006_v49, %v5702_v37  ;;  %v4409_v52 = vadd.f32 %v2458_v50, %v5704_v38  ;;  %v2008_v53 = vpop.f32.mrb[3].mxu0  ;;  %v2460_v54 = vpop.f32.mrb[3].mxu1  ;;  %v2533_v59 = vmax.f32 %v4375_v43, 0.0  ;;  %v2535_v60 = vmax.f32 %v4407_v44, 0.0 }
 0x1ff   :  { %v4378_v56 = vadd.f32 %v2008_v53, %v5707_v39  ;;  %v4410_v57 = vadd.f32 %v2460_v54, %v5709_v40  ;;  %v2534_v0 = vmax.f32 %v4376_v47, 0.0  ;;  %v2536_v1 = vmax.f32 %v4408_v48, 0.0  ;;  %v5184_v48 = vld [vmem:[%s6123_s5 + $0x30] ss:$8 sps:$4 sm:$0xff]   ;;  %v5133_v53 = vld [vmem:[%s6121_s3 + $0x120] ss:$8 sps:$4 sm:$0xff]  }
 0x200   :  { %v2537_v61 = vmax.f32 %v4377_v51, 0.0  ;;  %v2539_v62 = vmax.f32 %v4409_v52, 0.0  ;;  %v5189_v54 = vld [vmem:[%s6123_s5 + $0x44] ss:$8 sps:$4 sm:$0xff]   ;;  %3510 = vmatpush1.bf16.msra.mxu1 %v5184_v48 }
 0x201   :  { %v2538_v2 = vmax.f32 %v4378_v56, 0.0  ;;  %v2540_v3 = vmax.f32 %v4410_v57, 0.0  ;;  %3511 = vmatprep.subr.bf16.mxu1 %v5189_v54  ;;  %v5198_v54 = vld [vmem:[%s6123_s5 + $0x74] ss:$8 sps:$4 sm:$0xff]  }
 0x202   :  { %v2597_v4 = vpack.c.bf16 %v2537_v61, %v2533_v59  ;;  %v5728_v5 = vpack.c.bf16 %v2539_v62, %v2535_v60  ;;  %v5138_v59 = vld [vmem:[%s6121_s3 + $0x134] ss:$8 sps:$4 sm:$0xff]  }
 0x203   :  { %v2598_v7 = vpack.c.bf16 %v2538_v2, %v2534_v0  ;;  %v5733_v8 = vpack.c.bf16 %v2540_v3, %v2536_v1  ;;  %v2012_v9 = vpop.f32.mrb[4].mxu0  ;;  %v2464_v10 = vpop.f32.mrb[4].mxu1 }
 0x204   :  { %v4379_v13 = vadd.f32 %v2012_v9, %v5702_v37  ;;  %v4411_v14 = vadd.f32 %v2464_v10, %v5704_v38  ;;  %v2014_v15 = vpop.f32.mrb[5].mxu0  ;;  %v2466_v16 = vpop.f32.mrb[5].mxu1  ;;  %v5136_v9 = vld [vmem:[%s6121_s3 + $0x130] ss:$8 sps:$4 sm:$0xff]   ;;  %v5192_v10 = vld [vmem:[%s6123_s5 + $0x54] ss:$8 sps:$4 sm:$0xff]  }
 0x205   :  { %v4380_v18 = vadd.f32 %v2014_v15, %v5707_v39  ;;  %v4412_v19 = vadd.f32 %v2466_v16, %v5709_v40  ;;  %v2016_v20 = vpop.f32.mrb[6].mxu0  ;;  %v2468_v21 = vpop.f32.mrb[6].mxu1  ;;  %3057 = vmatprep.mubr.bf16.mxu0 %v2598_v7  ;;  %v5141_v15 = vld [vmem:[%s6121_s3 + $0x144] ss:$8 sps:$4 sm:$0xff]  }
 0x206   :  { %v4381_v22 = vadd.f32 %v2016_v20, %v5702_v37  ;;  %v4413_v23 = vadd.f32 %v2468_v21, %v5704_v38  ;;  %v2018_v24 = vpop.f32.mrb[7].mxu0  ;;  %v2470_v25 = vpop.f32.mrb[7].mxu1  ;;  %3058 = vmatmul.mubr.bf16.vlgmr.msra.gmra.mrb[32].mxu0 %v2597_v4  ;;  %v2541_v31 = vmax.f32 %v4379_v13, 0.0  ;;  %v2543_v33 = vmax.f32 %v4411_v14, 0.0  ;;  %v5187_v4 = vld [vmem:[%s6123_s5 + $0x40] ss:$8 sps:$4 sm:$0xff]  }
 0x207   :  { %v4382_v27 = vadd.f32 %v2018_v24, %v5707_v39  ;;  %v4414_v28 = vadd.f32 %v2470_v25, %v5709_v40  ;;  %3139 = vmatpush1.bf16.msra.mxu0 %v5127_v11  ;;  %v2542_v42 = vmax.f32 %v4380_v18, 0.0  ;;  %v2544_v43 = vmax.f32 %v4412_v19, 0.0  ;;  %3512 = vmatpush1.bf16.msra.mxu1 %v5187_v4 }
 0x208   :  { %v2545_v34 = vmax.f32 %v4381_v22, 0.0  ;;  %v2547_v36 = vmax.f32 %v4413_v23, 0.0  ;;  %3140 = vmatprep.subr.bf16.mxu0 %v5132_v17  ;;  %v5190_v22 = vld [vmem:[%s6123_s5 + $0x50] ss:$8 sps:$4 sm:$0xff]   ;;  %3513 = vmatprep.subr.bf16.mxu1 %v5192_v10  ;;  %v5201_v10 = vld [vmem:[%s6123_s5 + $0x84] ss:$8 sps:$4 sm:$0xff]  }
 0x209   :  { %v2546_v44 = vmax.f32 %v4382_v27, 0.0  ;;  %v2548_v45 = vmax.f32 %v4414_v28, 0.0  ;;  %v5139_v27 = vld [vmem:[%s6121_s3 + $0x140] ss:$8 sps:$4 sm:$0xff]   ;;  %v5195_v28 = vld [vmem:[%s6123_s5 + $0x64] ss:$8 sps:$4 sm:$0xff]  }
 0x20a   :  { %v2601_v46 = vpack.c.bf16 %v2545_v34, %v2541_v31  ;;  %v5764_v47 = vpack.c.bf16 %v2547_v36, %v2543_v33  ;;  %v5144_v34 = vld [vmem:[%s6121_s3 + $0x154] ss:$8 sps:$4 sm:$0xff]  }
 0x20b   :  { %v2602_v49 = vpack.c.bf16 %v2546_v44, %v2542_v42  ;;  %v5769_v50 = vpack.c.bf16 %v2548_v45, %v2544_v43  ;;  %v2022_v51 = vpop.f32.mrb[8].mxu0  ;;  %v2474_v52 = vpop.f32.mrb[8].mxu1  ;;  %3141 = vmatpush1.bf16.msra.mxu0 %v5130_v29  ;;  %3514 = vmatpush1.bf16.msra.mxu1 %v5190_v22 }
 0x20c   :  { %v4383_v55 = vadd.f32 %v2022_v51, %v5702_v37  ;;  %v4415_v56 = vadd.f32 %v2474_v52, %v5704_v38  ;;  %v2024_v57 = vpop.f32.mrb[9].mxu0  ;;  %v2476_v58 = vpop.f32.mrb[9].mxu1  ;;  %3142 = vmatprep.subr.bf16.mxu0 %v5135_v41  ;;  %3515 = vmatprep.subr.bf16.mxu1 %v5195_v28 }
 0x20d   :  { %v4384_v60 = vadd.f32 %v2024_v57, %v5707_v39  ;;  %v4416_v61 = vadd.f32 %v2476_v58, %v5709_v40  ;;  %v2026_v62 = vpop.f32.mrb[10].mxu0  ;;  %v2478_v63 = vpop.f32.mrb[10].mxu1  ;;  %3067 = vmatprep.mubr.bf16.mxu0 %v2602_v49  ;;  %v5193_v49 = vld [vmem:[%s6123_s5 + $0x60] ss:$8 sps:$4 sm:$0xff]  }
 0x20e   :  { %v4385_v0 = vadd.f32 %v2026_v62, %v5702_v37  ;;  %v4417_v1 = vadd.f32 %v2478_v63, %v5704_v38  ;;  %v2028_v2 = vpop.f32.mrb[11].mxu0  ;;  %v2480_v3 = vpop.f32.mrb[11].mxu1  ;;  %3068 = vmatmul.mubr.bf16.gmra.mrb[36].mxu0 %v2601_v46  ;;  %v2549_v11 = vmax.f32 %v4383_v55, 0.0  ;;  %v2551_v12 = vmax.f32 %v4415_v56, 0.0 }
 0x20f   :  { %v4386_v6 = vadd.f32 %v2028_v2, %v5707_v39  ;;  %v4418_v7 = vadd.f32 %v2480_v3, %v5709_v40  ;;  %3143 = vmatpush1.bf16.msra.mxu0 %v5133_v53  ;;  %v2550_v16 = vmax.f32 %v4384_v60, 0.0  ;;  %v2552_v17 = vmax.f32 %v4416_v61, 0.0  ;;  %v5142_v53 = vld [vmem:[%s6121_s3 + $0x150] ss:$8 sps:$4 sm:$0xff]   ;;  %3516 = vmatpush1.bf16.msra.mxu1 %v5193_v49 }
 0x210   :  { %v2553_v13 = vmax.f32 %v4385_v0, 0.0  ;;  %v2555_v14 = vmax.f32 %v4417_v1, 0.0  ;;  %3144 = vmatprep.subr.bf16.mxu0 %v5138_v59  ;;  %v5147_v59 = vld [vmem:[%s6121_s3 + $0x164] ss:$8 sps:$4 sm:$0xff]   ;;  %v5196_v2 = vld [vmem:[%s6123_s5 + $0x70] ss:$8 sps:$4 sm:$0xff]   ;;  %3517 = vmatprep.subr.bf16.mxu1 %v5198_v54 }
 0x211   :  { %v2554_v18 = vmax.f32 %v4386_v6, 0.0  ;;  %v2556_v19 = vmax.f32 %v4418_v7, 0.0  ;;  %v5202_v49 = vld [vmem:[%s6123_s5 + $0x90] ss:$8 sps:$4 sm:$0xff]  }
 0x212   :  { %v2605_v20 = vpack.c.bf16 %v2553_v13, %v2549_v11  ;;  %v5800_v21 = vpack.c.bf16 %v2555_v14, %v2551_v12 }
 0x213   :  { %v2606_v23 = vpack.c.bf16 %v2554_v18, %v2550_v16  ;;  %v5805_v24 = vpack.c.bf16 %v2556_v19, %v2552_v17  ;;  %v2032_v25 = vpop.f32.mrb[12].mxu0  ;;  %v2484_v26 = vpop.f32.mrb[12].mxu1  ;;  %3145 = vmatpush1.bf16.msra.mxu0 %v5136_v9  ;;  %v5145_v9 = vld [vmem:[%s6121_s3 + $0x160] ss:$8 sps:$4 sm:$0xff]   ;;  %3518 = vmatpush1.bf16.msra.mxu1 %v5196_v2 }
 0x214   :  { %v4387_v29 = vadd.f32 %v2032_v25, %v5702_v37  ;;  %v4419_v30 = vadd.f32 %v2484_v26, %v5704_v38  ;;  %v2034_v31 = vpop.f32.mrb[13].mxu0  ;;  %v2486_v33 = vpop.f32.mrb[13].mxu1  ;;  %3146 = vmatprep.subr.bf16.mxu0 %v5141_v15  ;;  %v5150_v15 = vld [vmem:[%s6121_s3 + $0x174] ss:$8 sps:$4 sm:$0xff]   ;;  %v5199_v26 = vld [vmem:[%s6123_s5 + $0x80] ss:$8 sps:$4 sm:$0xff]   ;;  %3519 = vmatprep.subr.bf16.mxu1 %v5201_v10 }
 0x215   :  { %v4388_v36 = vadd.f32 %v2034_v31, %v5707_v39  ;;  %v4420_v41 = vadd.f32 %v2486_v33, %v5709_v40  ;;  %v2036_v42 = vpop.f32.mrb[14].mxu0  ;;  %v2488_v43 = vpop.f32.mrb[14].mxu1  ;;  %3077 = vmatprep.mubr.bf16.mxu0 %v2606_v23  ;;  %v5205_v10 = vld [vmem:[%s6123_s5 + $0xa0] ss:$8 sps:$4 sm:$0xff]  }
 0x216   :  { %v4389_v44 = vadd.f32 %v2036_v42, %v5702_v37  ;;  %v4421_v45 = vadd.f32 %v2488_v43, %v5704_v38  ;;  %v2038_v46 = vpop.f32.mrb[15].mxu0  ;;  %v2490_v48 = vpop.f32.mrb[15].mxu1  ;;  %3078 = vmatmul.mubr.bf16.gmra.mrb[40].mxu0 %v2605_v20  ;;  %v2557_v55 = vmax.f32 %v4387_v29, 0.0  ;;  %v2559_v56 = vmax.f32 %v4419_v30, 0.0  ;;  %v5148_v29 = vld [vmem:[%s6121_s3 + $0x170] ss:$8 sps:$4 sm:$0xff]  }
 0x217   :  { %v4390_v51 = vadd.f32 %v2038_v46, %v5707_v39  ;;  %v4422_v52 = vadd.f32 %v2490_v48, %v5709_v40  ;;  %3147 = vmatpush1.bf16.msra.mxu0 %v5139_v27  ;;  %v2558_v60 = vmax.f32 %v4388_v36, 0.0  ;;  %v2560_v61 = vmax.f32 %v4420_v41, 0.0  ;;  %v5204_v30 = vld [vmem:[%s6123_s5 + $0x94] ss:$8 sps:$4 sm:$0xff]   ;;  %v5153_v41 = vld [vmem:[%s6121_s3 + $0x184] ss:$8 sps:$4 sm:$0xff]   ;;  %3520 = vmatpush1.bf16.msra.mxu1 %v5199_v26 }
 0x218   :  { %v2561_v57 = vmax.f32 %v4389_v44, 0.0  ;;  %v2563_v58 = vmax.f32 %v4421_v45, 0.0  ;;  %3148 = vmatprep.subr.bf16.mxu0 %v5144_v34  ;;  %3521 = vmatprep.subr.bf16.mxu1 %v5204_v30 }
 0x219   :  { %v2562_v62 = vmax.f32 %v4390_v51, 0.0  ;;  %v2564_v63 = vmax.f32 %v4422_v52, 0.0 }
 0x21a   :  { %v2609_v0 = vpack.c.bf16 %v2561_v57, %v2557_v55  ;;  %v5836_v1 = vpack.c.bf16 %v2563_v58, %v2559_v56  ;;  %v5151_v55 = vld [vmem:[%s6121_s3 + $0x180] ss:$8 sps:$4 sm:$0xff]   ;;  %v5207_v56 = vld [vmem:[%s6123_s5 + $0xa4] ss:$8 sps:$4 sm:$0xff]  }
 0x21b   :  { %v2610_v3 = vpack.c.bf16 %v2562_v62, %v2558_v60  ;;  %v5841_v4 = vpack.c.bf16 %v2564_v63, %v2560_v61  ;;  %v2042_v6 = vpop.f32.mrb[16].mxu0  ;;  %v2494_v7 = vpop.f32.mrb[16].mxu1  ;;  %3149 = vmatpush1.bf16.msra.mxu0 %v5142_v53  ;;  %v5156_v61 = vld [vmem:[%s6121_s3 + $0x194] ss:$8 sps:$4 sm:$0xff]   ;;  %3522 = vmatpush1.bf16.msra.mxu1 %v5202_v49 }
 0x21c   :  { %v4391_v11 = vadd.f32 %v2042_v6, %v5702_v37  ;;  %v4423_v12 = vadd.f32 %v2494_v7, %v5704_v38  ;;  %v2044_v13 = vpop.f32.mrb[17].mxu0  ;;  %v2496_v14 = vpop.f32.mrb[17].mxu1  ;;  %3150 = vmatprep.subr.bf16.mxu0 %v5147_v59  ;;  %3523 = vmatprep.subr.bf16.mxu1 %v5207_v56 }
 0x21d   :  { %v4392_v16 = vadd.f32 %v2044_v13, %v5707_v39  ;;  %v4424_v17 = vadd.f32 %v2496_v14, %v5709_v40  ;;  %v2046_v18 = vpop.f32.mrb[18].mxu0  ;;  %v2498_v19 = vpop.f32.mrb[18].mxu1  ;;  %3087 = vmatprep.mubr.bf16.mxu0 %v2610_v3  ;;  %v5154_v13 = vld [vmem:[%s6121_s3 + $0x190] ss:$8 sps:$4 sm:$0xff]   ;;  %v5210_v14 = vld [vmem:[%s6123_s5 + $0xb4] ss:$8 sps:$4 sm:$0xff]  }
 0x21e   :  { %v4393_v20 = vadd.f32 %v2046_v18, %v5702_v37  ;;  %v4425_v22 = vadd.f32 %v2498_v19, %v5704_v38  ;;  %v2048_v23 = vpop.f32.mrb[19].mxu0  ;;  %v2500_v25 = vpop.f32.mrb[19].mxu1  ;;  %3088 = vmatmul.mubr.bf16.gmra.mrb[44].mxu0 %v2609_v0  ;;  %v2565_v31 = vmax.f32 %v4391_v11, 0.0  ;;  %v2567_v33 = vmax.f32 %v4423_v12, 0.0  ;;  %v5159_v19 = vld [vmem:[%s6121_s3 + $0x1a4] ss:$8 sps:$4 sm:$0xff]  }
 0x21f   :  { %v4394_v27 = vadd.f32 %v2048_v23, %v5707_v39  ;;  %v4426_v28 = vadd.f32 %v2500_v25, %v5709_v40  ;;  %3151 = vmatpush1.bf16.msra.mxu0 %v5145_v9  ;;  %v2566_v42 = vmax.f32 %v4392_v16, 0.0  ;;  %v2568_v43 = vmax.f32 %v4424_v17, 0.0  ;;  %3524 = vmatpush1.bf16.msra.mxu1 %v5205_v10 }
 0x220   :  { %v2569_v34 = vmax.f32 %v4393_v20, 0.0  ;;  %v2571_v36 = vmax.f32 %v4425_v22, 0.0  ;;  %3152 = vmatprep.subr.bf16.mxu0 %v5150_v15  ;;  %3525 = vmatprep.subr.bf16.mxu1 %v5210_v14  ;;  %v5214_v14 = vld [vmem:[%s6123_s5 + $0xd0] ss:$8 sps:$4 sm:$0xff]  }
 0x221   :  { %v2570_v44 = vmax.f32 %v4394_v27, 0.0  ;;  %v2572_v45 = vmax.f32 %v4426_v28, 0.0  ;;  %v5208_v28 = vld [vmem:[%s6123_s5 + $0xb0] ss:$8 sps:$4 sm:$0xff]  }
 0x222   :  { %v2613_v46 = vpack.c.bf16 %v2569_v34, %v2565_v31  ;;  %v5872_v48 = vpack.c.bf16 %v2571_v36, %v2567_v33  ;;  %v5157_v34 = vld [vmem:[%s6121_s3 + $0x1a0] ss:$8 sps:$4 sm:$0xff]   ;;  %v5213_v36 = vld [vmem:[%s6123_s5 + $0xc4] ss:$8 sps:$4 sm:$0xff]  }
 0x223   :  { %v2614_v51 = vpack.c.bf16 %v2570_v44, %v2566_v42  ;;  %v5877_v52 = vpack.c.bf16 %v2572_v45, %v2568_v43  ;;  %v2052_v53 = vpop.f32.mrb[20].mxu0  ;;  %v2504_v54 = vpop.f32.mrb[20].mxu1  ;;  %3153 = vmatpush1.bf16.msra.mxu0 %v5148_v29  ;;  %v5162_v45 = vld [vmem:[%s6121_s3 + $0x1b4] ss:$8 sps:$4 sm:$0xff]   ;;  %3526 = vmatpush1.bf16.msra.mxu1 %v5208_v28 }
 0x224   :  { %v4395_v57 = vadd.f32 %v2052_v53, %v5702_v37  ;;  %v4427_v58 = vadd.f32 %v2504_v54, %v5704_v38  ;;  %v2054_v59 = vpop.f32.mrb[21].mxu0  ;;  %v2506_v60 = vpop.f32.mrb[21].mxu1  ;;  %3154 = vmatprep.subr.bf16.mxu0 %v5153_v41  ;;  %3527 = vmatprep.subr.bf16.mxu1 %v5213_v36 }
 0x225   :  { %v4396_v62 = vadd.f32 %v2054_v59, %v5707_v39  ;;  %v4428_v63 = vadd.f32 %v2506_v60, %v5709_v40  ;;  %v2056_v0 = vpop.f32.mrb[22].mxu0  ;;  %v2508_v2 = vpop.f32.mrb[22].mxu1  ;;  %3097 = vmatprep.mubr.bf16.mxu0 %v2614_v51 }
 0x226   :  { %v4397_v3 = vadd.f32 %v2056_v0, %v5702_v37  ;;  %v4429_v6 = vadd.f32 %v2508_v2, %v5704_v38  ;;  %v2058_v7 = vpop.f32.mrb[23].mxu0  ;;  %v2510_v9 = vpop.f32.mrb[23].mxu1  ;;  %3098 = vmatmul.mubr.bf16.gmra.mrb[48].mxu0 %v2613_v46  ;;  %v2573_v15 = vmax.f32 %v4395_v57, 0.0  ;;  %v2575_v16 = vmax.f32 %v4427_v58, 0.0  ;;  %v5211_v58 = vld [vmem:[%s6123_s5 + $0xc0] ss:$8 sps:$4 sm:$0xff]  }
 0x227   :  { %v4398_v11 = vadd.f32 %v2058_v7, %v5707_v39  ;;  %v4430_v12 = vadd.f32 %v2510_v9, %v5709_v40  ;;  %3155 = vmatpush1.bf16.msra.mxu0 %v5151_v55  ;;  %v2574_v20 = vmax.f32 %v4396_v62, 0.0  ;;  %v2576_v22 = vmax.f32 %v4428_v63, 0.0  ;;  %v5216_v62 = vld [vmem:[%s6123_s5 + $0xd4] ss:$8 sps:$4 sm:$0xff]   ;;  %3528 = vmatpush1.bf16.msra.mxu1 %v5211_v58 }
 0x228   :  { %v2577_v17 = vmax.f32 %v4397_v3, 0.0  ;;  %v2579_v18 = vmax.f32 %v4429_v6, 0.0  ;;  %3156 = vmatprep.subr.bf16.mxu0 %v5156_v61  ;;  %v5160_v61 = vld [vmem:[%s6121_s3 + $0x1b0] ss:$8 sps:$4 sm:$0xff]   ;;  %v5165_v6 = vld [vmem:[%s6121_s3 + $0x1c4] ss:$8 sps:$4 sm:$0xff]   ;;  %3529 = vmatprep.subr.bf16.mxu1 %v5216_v62 }
 0x229   :  { %v2578_v23 = vmax.f32 %v4398_v11, 0.0  ;;  %v2580_v25 = vmax.f32 %v4430_v12, 0.0 }
 0x22a   :  { %v2617_v26 = vpack.c.bf16 %v2577_v17, %v2573_v15  ;;  %v5908_v27 = vpack.c.bf16 %v2579_v18, %v2575_v16 }
 0x22b   :  { %v2618_v29 = vpack.c.bf16 %v2578_v23, %v2574_v20  ;;  %v5913_v30 = vpack.c.bf16 %v2580_v25, %v2576_v22  ;;  %v2062_v31 = vpop.f32.mrb[24].mxu0  ;;  %v2514_v33 = vpop.f32.mrb[24].mxu1  ;;  %3157 = vmatpush1.bf16.msra.mxu0 %v5154_v13  ;;  %3530 = vmatpush1.bf16.msra.mxu1 %v5214_v14 }
 0x22c   :  { %v4399_v41 = vadd.f32 %v2062_v31, %v5702_v37  ;;  %v4431_v42 = vadd.f32 %v2514_v33, %v5704_v38  ;;  %v2064_v43 = vpop.f32.mrb[25].mxu0  ;;  %v2516_v44 = vpop.f32.mrb[25].mxu1  ;;  %3158 = vmatprep.subr.bf16.mxu0 %v5159_v19  ;;  %v5163_v19 = vld [vmem:[%s6121_s3 + $0x1c0] ss:$8 sps:$4 sm:$0xff]  }
 0x22d   :  { %v4400_v46 = vadd.f32 %v2064_v43, %v5707_v39  ;;  %v4432_v49 = vadd.f32 %v2516_v44, %v5709_v40  ;;  %v2066_v51 = vpop.f32.mrb[26].mxu0  ;;  %v2518_v53 = vpop.f32.mrb[26].mxu1  ;;  %3107 = vmatprep.mubr.bf16.mxu0 %v2618_v29 }
 0x22e   :  { %v4401_v54 = vadd.f32 %v2066_v51, %v5702_v37  ;;  %v4433_v55 = vadd.f32 %v2518_v53, %v5704_v38  ;;  %v2068_v56 = vpop.f32.mrb[27].mxu0  ;;  %v2520_v57 = vpop.f32.mrb[27].mxu1  ;;  %3108 = vmatmul.mubr.bf16.gmra.mrb[52].mxu0 %v2617_v26  ;;  %v2581_v63 = vmax.f32 %v4399_v41, 0.0  ;;  %v2583_v0 = vmax.f32 %v4431_v42, 0.0  ;;  %v5168_v26 = vld [vmem:[%s6121_s3 + $0x1d4] ss:$8 sps:$4 sm:$0xff]  }
 0x22f   :  { %v4402_v59 = vadd.f32 %v2068_v56, %v5707_v39  ;;  %v4434_v60 = vadd.f32 %v2520_v57, %v5709_v40  ;;  %3159 = vmatpush1.bf16.msra.mxu0 %v5157_v34  ;;  %v2582_v7 = vmax.f32 %v4400_v46, 0.0  ;;  %v2584_v9 = vmax.f32 %v4432_v49, 0.0 }
 0x230   :  { %v2585_v2 = vmax.f32 %v4401_v54, 0.0  ;;  %v2587_v3 = vmax.f32 %v4433_v55, 0.0  ;;  %3160 = vmatprep.subr.bf16.mxu0 %v5162_v45  ;;  %v5166_v45 = vld [vmem:[%s6121_s3 + $0x1d0] ss:$8 sps:$4 sm:$0xff]  }
 0x231   :  { %v2586_v10 = vmax.f32 %v4402_v59, 0.0  ;;  %v2588_v11 = vmax.f32 %v4434_v60, 0.0  ;;  %v5169_v59 = vld [vmem:[%s6121_s3 + $0x1e0] ss:$8 sps:$4 sm:$0xff]   ;;  %v5174_v60 = vld [vmem:[%s6121_s3 + $0x1f4] ss:$8 sps:$4 sm:$0xff]  }
 0x232   :  { %v2621_v12 = vpack.c.bf16 %v2585_v2, %v2581_v63  ;;  %v5944_v13 = vpack.c.bf16 %v2587_v3, %v2583_v0 }
 0x233   :  { %v2622_v15 = vpack.c.bf16 %v2586_v10, %v2582_v7  ;;  %v2624_v16 = vpack.c.bf16 %v2588_v11, %v2584_v9  ;;  %v2072_v17 = vpop.f32.mrb[28].mxu0  ;;  %v2524_v18 = vpop.f32.mrb[28].mxu1  ;;  %3161 = vmatpush1.bf16.msra.mxu0 %v5160_v61  ;;  %v5172_v61 = vld [vmem:[%s6121_s3 + $0x1f0] ss:$8 sps:$4 sm:$0xff]  }
 0x234   :  { %v4403_v20 = vadd.f32 %v2072_v17, %v5702_v37  ;;  %v4435_v22 = vadd.f32 %v2524_v18, %v5704_v38  ;;  %v2074_v23 = vpop.f32.mrb[29].mxu0  ;;  %v2526_v25 = vpop.f32.mrb[29].mxu1  ;;  %3162 = vmatprep.subr.bf16.mxu0 %v5165_v6 }
 0x235   :  { %v4404_v28 = vadd.f32 %v2074_v23, %v5707_v39  ;;  %v4436_v29 = vadd.f32 %v2526_v25, %v5709_v40  ;;  %v2076_v31 = vpop.f32.mrb[30].mxu0  ;;  %v2528_v33 = vpop.f32.mrb[30].mxu1  ;;  %3117 = vmatprep.mubr.bf16.mxu0 %v2622_v15  ;;  %v5226_v23 = vld [vmem:[#allocation5 + $0x8] sm:$0xff]  }
 0x236   :  { %v4405_v34 = vadd.f32 %v2076_v31, %v5702_v37  ;;  %v4437_v36 = vadd.f32 %v2528_v33, %v5704_v38  ;;  %v2078_v41 = vpop.f32.mrb[31].mxu0  ;;  %v2530_v42 = vpop.f32.mrb[31].mxu1  ;;  %3118 = vmatmul.mubr.bf16.gmra.mrb[56].mxu0 %v2621_v12  ;;  %v2589_v46 = vmax.f32 %v4403_v20, 0.0  ;;  %v2591_v49 = vmax.f32 %v4435_v22, 0.0  ;;  %v5171_v37 = vld [vmem:[%s6121_s3 + $0x1e4] ss:$8 sps:$4 sm:$0xff]  }
 0x237   :  { %v4406_v43 = vadd.f32 %v2078_v41, %v5707_v39  ;;  %v4438_v44 = vadd.f32 %v2530_v42, %v5709_v40  ;;  %3163 = vmatpush1.bf16.msra.mxu0 %v5163_v19  ;;  %v2590_v38 = vmax.f32 %v4404_v28, 0.0  ;;  %v2592_v54 = vmax.f32 %v4436_v29, 0.0  ;;  %v5227_v28 = vld [vmem:[#allocation5 + $0x50] sm:$0xff]  }
 0x238   :  { %v2593_v51 = vmax.f32 %v4405_v34, 0.0  ;;  %v2595_v53 = vmax.f32 %v4437_v36, 0.0  ;;  %3164 = vmatprep.subr.bf16.mxu0 %v5168_v26  ;;  %v5228_v41 = vld [vmem:[#allocation5 + $0x10] sm:$0xff]  }
 0x239   :  { %v2594_v55 = vmax.f32 %v4406_v43, 0.0  ;;  %v2596_v39 = vmax.f32 %v4438_v44, 0.0  ;;  %v5229_v44 = vld [vmem:[#allocation5 + $0x58] sm:$0xff]  }
 0x23a   :  { %v2625_v56 = vpack.c.bf16 %v2593_v51, %v2589_v46  ;;  %v2627_v40 = vpack.c.bf16 %v2595_v53, %v2591_v49 }
 0x23b   :  { %v2626_v57 = vpack.c.bf16 %v2594_v55, %v2590_v38  ;;  %v2628_v58 = vpack.c.bf16 %v2596_v39, %v2592_v54  ;;  %3165 = vmatpush1.bf16.msra.mxu0 %v5166_v45  ;;  %v5231_v55 = vld [vmem:[#allocation5 + $0x60] sm:$0xff]  }
 0x23c   :  { %3166 = vmatprep.subr.bf16.mxu0 %v5171_v37  ;;  %v5230_v37 = vld [vmem:[#allocation5 + $0x18] sm:$0xff]  }
 0x23d   :  { %3127 = vmatprep.mubr.bf16.mxu0 %v2626_v57 }
 0x23e   :  { %3128 = vmatmul.mubr.bf16.gmra.mrb[60].mxu0 %v2625_v56 }
 0x23f   :  { %3167 = vmatpush1.bf16.msra.mxu0 %v5169_v59  ;;  %3170 = vmatprep.mubr.bf16.mxu0 %v5733_v8  ;;  %v5217_v8 = vld [vmem:[%s6123_s5 + $0xe0] ss:$8 sps:$4 sm:$0xff]  }
 0x240   :  { %3168 = vmatprep.subr.bf16.mxu0 %v5174_v60  ;;  %v5232_v59 = vld [vmem:[#allocation5 + $0x20] sm:$0xff]  }
 0x243   :  { %3169 = vmatpush1.bf16.msra.mxu0 %v5172_v61 }
 0x246   :  { %3171 = vmatmul.mubr.bf16.vlgmr.msra.gmra.mrb[32].mxu0 %v5728_v5  ;;  %v5219_v5 = vld [vmem:[%s6123_s5 + $0xe4] ss:$8 sps:$4 sm:$0xff]  }
 0x247   :  { %3180 = vmatprep.mubr.bf16.mxu0 %v5769_v50  ;;  %3531 = vmatprep.subr.bf16.mxu1 %v5219_v5  ;;  %v5220_v50 = vld [vmem:[%s6123_s5 + $0xf0] ss:$8 sps:$4 sm:$0xff]   ;;  %v5233_v5 = vld [vmem:[#allocation5 + $0x68] sm:$0xff]  }
 0x248   :  { %3532 = vmatpush1.bf16.msra.mxu1 %v5217_v8 }
 0x24e   :  { %3181 = vmatmul.mubr.bf16.gmra.mrb[36].mxu0 %v5764_v47  ;;  %v5222_v47 = vld [vmem:[%s6123_s5 + $0xf4] ss:$8 sps:$4 sm:$0xff]  }
 0x24f   :  { %3190 = vmatprep.mubr.bf16.mxu0 %v5805_v24  ;;  %3533 = vmatprep.subr.bf16.mxu1 %v5222_v47  ;;  %v2693_v24 = vld [vmem:[%s6122_s4] sm:$0x3] }
 0x250   :  { %3534 = vmatpush1.bf16.msra.mxu1 %v5220_v50 }
 0x256   :  { %3191 = vmatmul.mubr.bf16.gmra.mrb[40].mxu0 %v5800_v21  ;;  %v5223_v21 = vld [vmem:[#allocation5 + $0x40] sm:$0xff]  }
 0x257   :  { %3200 = vmatprep.mubr.bf16.mxu0 %v5841_v4  ;;  %4311 = vmatprep.subr.bf16.mxu1 %v5223_v21  ;;  %v6010_v4 = vrot.slane %v2693_v24, %v5699_v35 }
 0x25e   :  { %3201 = vmatmul.mubr.bf16.gmra.mrb[44].mxu0 %v5836_v1  ;;  %v6007_v1 = vrot.slane %v2693_v24, %v5694_v32 }
 0x25f   :  { %3210 = vmatprep.mubr.bf16.mxu0 %v5877_v52 }
 0x266   :  { %3211 = vmatmul.mubr.bf16.gmra.mrb[48].mxu0 %v5872_v48 }
 0x267   :  { %3220 = vmatprep.mubr.bf16.mxu0 %v5913_v30 }
 0x26e   :  { %3221 = vmatmul.mubr.bf16.gmra.mrb[52].mxu0 %v5908_v27 }
 0x26f   :  { %3230 = vmatprep.mubr.bf16.mxu0 %v2624_v16  ;;  %v5225_v16 = vld [vmem:[#allocation5 + $0x48] sm:$0xff]  }
 0x276   :  { %3231 = vmatmul.mubr.bf16.gmra.mrb[56].mxu0 %v5944_v13  ;;  %v5224_v13 = vld [vmem:[#allocation5] sm:$0xff]  }
 0x277   :  { %3240 = vmatprep.mubr.bf16.mxu0 %v2628_v58 }
 0x27e   :  { %3241 = vmatmul.mubr.bf16.gmra.mrb[60].mxu0 %v2627_v40 }
 0x319   :  { %v3172_v48 = vpop.f32.mrb[32].mxu0 }
 0x31a   :  { %v4439_v52 = vadd.f32 %v3172_v48, %v6007_v1  ;;  %v3174_v27 = vpop.f32.mrb[33].mxu0  ;;  %v5234_v48 = vld [vmem:[#allocation5 + $0x28] sm:$0xff]  }
 0x31b   :  { %v4440_v30 = vadd.f32 %v3174_v27, %v6010_v4  ;;  %v3176_v62 = vpop.f32.mrb[34].mxu0 }
 0x31c   :  { %v4441_v63 = vadd.f32 %v3176_v62, %v6007_v1  ;;  %v3178_v0 = vpop.f32.mrb[35].mxu0  ;;  %v3251_v3 = vmax.f32 %v4439_v52, 0.0 }
 0x31d   :  { %v4442_v2 = vadd.f32 %v3178_v0, %v6010_v4  ;;  %v3252_v7 = vmax.f32 %v4440_v30, 0.0  ;;  %v5235_v30 = vld [vmem:[#allocation5 + $0x70] sm:$0xff]  }
 0x31e   :  { %v3253_v6 = vmax.f32 %v4441_v63, 0.0 }
 0x31f   :  { %v3254_v9 = vmax.f32 %v4442_v2, 0.0 }
 0x320   :  { %v3283_v10 = vpack.c.bf16 %v3253_v6, %v3251_v3  ;;  %v5236_v6 = vld [vmem:[#allocation5 + $0x30] sm:$0xff]  }
 0x321   :  { %v3284_v11 = vpack.c.bf16 %v3254_v9, %v3252_v7  ;;  %v3182_v12 = vpop.f32.mrb[36].mxu0 }
 0x322   :  { %v4443_v14 = vadd.f32 %v3182_v12, %v6007_v1  ;;  %v3184_v15 = vpop.f32.mrb[37].mxu0 }
 0x323   :  { %v4444_v17 = vadd.f32 %v3184_v15, %v6010_v4  ;;  %v3186_v18 = vpop.f32.mrb[38].mxu0  ;;  %3535 = vmatprep.mubr.bf16.mxu1 %v3284_v11 }
 0x324   :  { %v4445_v19 = vadd.f32 %v3186_v18, %v6007_v1  ;;  %v3188_v20 = vpop.f32.mrb[39].mxu0  ;;  %3536 = vmatmul.mubr.bf16.vlgmr.msra.gmra.mrb[32].mxu1 %v3283_v10  ;;  %v3255_v25 = vmax.f32 %v4443_v14, 0.0 }
 0x325   :  { %v4446_v22 = vadd.f32 %v3188_v20, %v6010_v4  ;;  %4312 = vmatpush3.bf16.msra.mxu1 %v5224_v13  ;;  %v3256_v29 = vmax.f32 %v4444_v17, 0.0 }
 0x326   :  { %v3257_v26 = vmax.f32 %v4445_v19, 0.0  ;;  %4313 = vmatprep.subr.bf16.mxu1 %v5225_v16 }
 0x327   :  { %v3258_v31 = vmax.f32 %v4446_v22, 0.0 }
 0x328   :  { %v3285_v33 = vpack.c.bf16 %v3257_v26, %v3255_v25 }
 0x329   :  { %v3286_v34 = vpack.c.bf16 %v3258_v31, %v3256_v29  ;;  %v3192_v36 = vpop.f32.mrb[40].mxu0  ;;  %4314 = vmatpush3.bf16.msra.mxu1 %v5226_v23 }
 0x32a   :  { %v4447_v42 = vadd.f32 %v3192_v36, %v6007_v1  ;;  %v3194_v43 = vpop.f32.mrb[41].mxu0  ;;  %4315 = vmatprep.subr.bf16.mxu1 %v5227_v28 }
 0x32b   :  { %v4448_v45 = vadd.f32 %v3194_v43, %v6010_v4  ;;  %v3196_v46 = vpop.f32.mrb[42].mxu0  ;;  %3545 = vmatprep.mubr.bf16.mxu1 %v3286_v34 }
 0x32c   :  { %v4449_v49 = vadd.f32 %v3196_v46, %v6007_v1  ;;  %v3198_v51 = vpop.f32.mrb[43].mxu0  ;;  %3546 = vmatmul.mubr.bf16.gmra.mrb[36].mxu1 %v3285_v33  ;;  %v3259_v38 = vmax.f32 %v4447_v42, 0.0 }
 0x32d   :  { %v4450_v53 = vadd.f32 %v3198_v51, %v6010_v4  ;;  %4316 = vmatpush3.bf16.msra.mxu1 %v5228_v41  ;;  %v3260_v39 = vmax.f32 %v4448_v45, 0.0 }
 0x32e   :  { %v3261_v54 = vmax.f32 %v4449_v49, 0.0  ;;  %4317 = vmatprep.subr.bf16.mxu1 %v5229_v44 }
 0x32f   :  { %v3262_v56 = vmax.f32 %v4450_v53, 0.0 }
 0x330   :  { %v3287_v40 = vpack.c.bf16 %v3261_v54, %v3259_v38 }
 0x331   :  { %v3288_v57 = vpack.c.bf16 %v3262_v56, %v3260_v39  ;;  %v3202_v58 = vpop.f32.mrb[44].mxu0  ;;  %4318 = vmatpush3.bf16.msra.mxu1 %v5230_v37 }
 0x332   :  { %v4451_v60 = vadd.f32 %v3202_v58, %v6007_v1  ;;  %v3204_v61 = vpop.f32.mrb[45].mxu0  ;;  %4319 = vmatprep.subr.bf16.mxu1 %v5231_v55 }
 0x333   :  { %v4452_v8 = vadd.f32 %v3204_v61, %v6010_v4  ;;  %v3206_v47 = vpop.f32.mrb[46].mxu0  ;;  %3555 = vmatprep.mubr.bf16.mxu1 %v3288_v57 }
 0x334   :  { %v4453_v50 = vadd.f32 %v3206_v47, %v6007_v1  ;;  %v3208_v21 = vpop.f32.mrb[47].mxu0  ;;  %3556 = vmatmul.mubr.bf16.gmra.mrb[40].mxu1 %v3287_v40  ;;  %v3263_v52 = vmax.f32 %v4451_v60, 0.0 }
 0x335   :  { %v4454_v24 = vadd.f32 %v3208_v21, %v6010_v4  ;;  %4320 = vmatpush3.bf16.msra.mxu1 %v5232_v59  ;;  %v3264_v62 = vmax.f32 %v4452_v8, 0.0 }
 0x336   :  { %v3265_v27 = vmax.f32 %v4453_v50, 0.0  ;;  %4321 = vmatprep.subr.bf16.mxu1 %v5233_v5 }
 0x337   :  { %v3266_v63 = vmax.f32 %v4454_v24, 0.0 }
 0x338   :  { %v3289_v0 = vpack.c.bf16 %v3265_v27, %v3263_v52 }
 0x339   :  { %v3290_v2 = vpack.c.bf16 %v3266_v63, %v3264_v62  ;;  %v3212_v3 = vpop.f32.mrb[48].mxu0  ;;  %4322 = vmatpush3.bf16.msra.mxu1 %v5234_v48  ;;  %v5237_v63 = vld [vmem:[#allocation5 + $0x78] sm:$0xff]  }
 0x33a   :  { %v4455_v7 = vadd.f32 %v3212_v3, %v6007_v1  ;;  %v3214_v9 = vpop.f32.mrb[49].mxu0  ;;  %4323 = vmatprep.subr.bf16.mxu1 %v5235_v30 }
 0x33b   :  { %v4456_v10 = vadd.f32 %v3214_v9, %v6010_v4  ;;  %v3216_v11 = vpop.f32.mrb[50].mxu0  ;;  %3565 = vmatprep.mubr.bf16.mxu1 %v3290_v2 }
 0x33c   :  { %v4457_v12 = vadd.f32 %v3216_v11, %v6007_v1  ;;  %v3218_v13 = vpop.f32.mrb[51].mxu0  ;;  %3566 = vmatmul.mubr.bf16.gmra.mrb[44].mxu1 %v3289_v0  ;;  %v3267_v15 = vmax.f32 %v4455_v7, 0.0  ;;  %v5238_v0 = vld [vmem:[#allocation5 + $0x38] sm:$0xff]  }
 0x33d   :  { %v4458_v14 = vadd.f32 %v3218_v13, %v6010_v4  ;;  %4324 = vmatpush3.bf16.msra.mxu1 %v5236_v6  ;;  %v3268_v17 = vmax.f32 %v4456_v10, 0.0 }
 0x33e   :  { %v3269_v16 = vmax.f32 %v4457_v12, 0.0  ;;  %4325 = vmatprep.subr.bf16.mxu1 %v5237_v63 }
 0x33f   :  { %v3270_v18 = vmax.f32 %v4458_v14, 0.0 }
 0x340   :  { %v3291_v19 = vpack.c.bf16 %v3269_v16, %v3267_v15 }
 0x341   :  { %v3292_v20 = vpack.c.bf16 %v3270_v18, %v3268_v17  ;;  %v3222_v22 = vpop.f32.mrb[52].mxu0  ;;  %4326 = vmatpush3.bf16.msra.mxu1 %v5238_v0 }
 0x342   :  { %v4459_v23 = vadd.f32 %v3222_v22, %v6007_v1  ;;  %v3224_v25 = vpop.f32.mrb[53].mxu0 }
 0x343   :  { %v4460_v26 = vadd.f32 %v3224_v25, %v6010_v4  ;;  %v3226_v28 = vpop.f32.mrb[54].mxu0  ;;  %3575 = vmatprep.mubr.bf16.mxu1 %v3292_v20 }
 0x344   :  { %v4461_v29 = vadd.f32 %v3226_v28, %v6007_v1  ;;  %v3228_v31 = vpop.f32.mrb[55].mxu0  ;;  %3576 = vmatmul.mubr.bf16.gmra.mrb[48].mxu1 %v3291_v19  ;;  %v3271_v34 = vmax.f32 %v4459_v23, 0.0 }
 0x345   :  { %v4462_v33 = vadd.f32 %v3228_v31, %v6010_v4  ;;  %v3272_v41 = vmax.f32 %v4460_v26, 0.0 }
 0x346   :  { %v3273_v36 = vmax.f32 %v4461_v29, 0.0 }
 0x347   :  { %v3274_v42 = vmax.f32 %v4462_v33, 0.0 }
 0x348   :  { %v3293_v43 = vpack.c.bf16 %v3273_v36, %v3271_v34 }
 0x349   :  { %v3294_v44 = vpack.c.bf16 %v3274_v42, %v3272_v41  ;;  %v3232_v45 = vpop.f32.mrb[56].mxu0 }
 0x34a   :  { %v4463_v46 = vadd.f32 %v3232_v45, %v6007_v1  ;;  %v3234_v49 = vpop.f32.mrb[57].mxu0 }
 0x34b   :  { %v4464_v51 = vadd.f32 %v3234_v49, %v6010_v4  ;;  %v3236_v53 = vpop.f32.mrb[58].mxu0  ;;  %3585 = vmatprep.mubr.bf16.mxu1 %v3294_v44 }
 0x34c   :  { %v4465_v37 = vadd.f32 %v3236_v53, %v6007_v1  ;;  %v3238_v38 = vpop.f32.mrb[59].mxu0  ;;  %3586 = vmatmul.mubr.bf16.gmra.mrb[52].mxu1 %v3293_v43  ;;  %v3275_v55 = vmax.f32 %v4463_v46, 0.0 }
 0x34d   :  { %v4466_v54 = vadd.f32 %v3238_v38, %v6010_v4  ;;  %v3276_v56 = vmax.f32 %v4464_v51, 0.0 }
 0x34e   :  { %v3277_v39 = vmax.f32 %v4465_v37, 0.0 }
 0x34f   :  { %v3278_v40 = vmax.f32 %v4466_v54, 0.0 }
 0x350   :  { %v3295_v57 = vpack.c.bf16 %v3277_v39, %v3275_v55 }
 0x351   :  { %v3296_v58 = vpack.c.bf16 %v3278_v40, %v3276_v56  ;;  %v3242_v59 = vpop.f32.mrb[60].mxu0 }
 0x352   :  { %v4467_v60 = vadd.f32 %v3242_v59, %v6007_v1  ;;  %v3244_v61 = vpop.f32.mrb[61].mxu0 }
 0x353   :  { %v4468_v5 = vadd.f32 %v3244_v61, %v6010_v4  ;;  %v3246_v8 = vpop.f32.mrb[62].mxu0  ;;  %3595 = vmatprep.mubr.bf16.mxu1 %v3296_v58 }
 0x354   :  { %v4469_v47 = vadd.f32 %v3246_v8, %v6007_v1  ;;  %v3248_v50 = vpop.f32.mrb[63].mxu0  ;;  %3596 = vmatmul.mubr.bf16.gmra.mrb[56].mxu1 %v3295_v57  ;;  %v3279_v24 = vmax.f32 %v4467_v60, 0.0  ;;  %v3331_v1 = vld [vmem:[%s6124_s6] sm:$0x3] }
 0x355   :  { %v4470_v21 = vadd.f32 %v3248_v50, %v6010_v4  ;;  %v3280_v52 = vmax.f32 %v4468_v5, 0.0  ;;  %v6048_v2 = vrot.slane %v3331_v1, %v5694_v32  ;;  %v6051_v4 = vrot.slane %v3331_v1, %v5699_v35 }
 0x356   :  { %v3281_v48 = vmax.f32 %v4469_v47, 0.0 }
 0x357   :  { %v3282_v27 = vmax.f32 %v4470_v21, 0.0 }
 0x358   :  { %v3297_v30 = vpack.c.bf16 %v3281_v48, %v3279_v24 }
 0x359   :  { %v3298_v62 = vpack.c.bf16 %v3282_v27, %v3280_v52 }
 0x35b   :  { %3605 = vmatprep.mubr.bf16.mxu1 %v3298_v62 }
 0x35c   :  { %3606 = vmatmul.mubr.bf16.gmra.mrb[60].mxu1 %v3297_v30 }
 0x3f7   :  { %v3537_v3 = vpop.f32.mrb[32].mxu1 }
 0x3f8   :  { %v3538_v6 = vadd.f32 %v3537_v3, %v6048_v2  ;;  %v3539_v7 = vpop.f32.mrb[33].mxu1 }
 0x3f9   :  { %v3540_v9 = vadd.f32 %v3539_v7, %v6051_v4  ;;  %v3541_v10 = vpop.f32.mrb[34].mxu1 }
 0x3fa   :  { %v3542_v11 = vadd.f32 %v3541_v10, %v6048_v2  ;;  %v3543_v12 = vpop.f32.mrb[35].mxu1  ;;  %v3616_v14 = vmax.f32 %v3538_v6, 0.0 }
 0x3fb   :  { %v3544_v13 = vadd.f32 %v3543_v12, %v6051_v4  ;;  %v3617_v16 = vmax.f32 %v3540_v9, 0.0 }
 0x3fc   :  { %v3618_v15 = vmax.f32 %v3542_v11, 0.0 }
 0x3fd   :  { %v3619_v32 = vmax.f32 %v3544_v13, 0.0 }
 0x3fe   :  { %v3648_v17 = vpack.c.bf16 %v3618_v15, %v3616_v14 }
 0x3ff   :  { %v3649_v18 = vpack.c.bf16 %v3619_v32, %v3617_v16  ;;  %v3547_v35 = vpop.f32.mrb[36].mxu1 }
 0x400   :  { %v3548_v19 = vadd.f32 %v3547_v35, %v6048_v2  ;;  %v3549_v20 = vpop.f32.mrb[37].mxu1 }
 0x401   :  { %v3550_v22 = vadd.f32 %v3549_v20, %v6051_v4  ;;  %v3551_v23 = vpop.f32.mrb[38].mxu1  ;;  %3831 = vmatprep.mubr.bf16.mxu1 %v3649_v18 }
 0x402   :  { %v3552_v25 = vadd.f32 %v3551_v23, %v6048_v2  ;;  %v3553_v26 = vpop.f32.mrb[39].mxu1  ;;  %3832 = vmatmul.mubr.bf16.vlgmr.msra.gmra.mrb[64].mxu1 %v3648_v17  ;;  %v3620_v29 = vmax.f32 %v3548_v19, 0.0 }
 0x403   :  { %v3554_v28 = vadd.f32 %v3553_v26, %v6051_v4  ;;  %v3621_v33 = vmax.f32 %v3550_v22, 0.0 }
 0x404   :  { %v3622_v31 = vmax.f32 %v3552_v25, 0.0 }
 0x405   :  { %v3623_v34 = vmax.f32 %v3554_v28, 0.0 }
 0x406   :  { %v3650_v36 = vpack.c.bf16 %v3622_v31, %v3620_v29 }
 0x407   :  { %v3651_v41 = vpack.c.bf16 %v3623_v34, %v3621_v33  ;;  %v3557_v42 = vpop.f32.mrb[40].mxu1 }
 0x408   :  { %v3558_v43 = vadd.f32 %v3557_v42, %v6048_v2  ;;  %v3559_v44 = vpop.f32.mrb[41].mxu1 }
 0x409   :  { %v3560_v45 = vadd.f32 %v3559_v44, %v6051_v4  ;;  %v3561_v46 = vpop.f32.mrb[42].mxu1  ;;  %3839 = vmatprep.mubr.bf16.mxu1 %v3651_v41 }
 0x40a   :  { %v3562_v49 = vadd.f32 %v3561_v46, %v6048_v2  ;;  %v3563_v51 = vpop.f32.mrb[43].mxu1  ;;  %3840 = vmatmul.mubr.bf16.gmra.mrb[68].mxu1 %v3650_v36  ;;  %v3624_v37 = vmax.f32 %v3558_v43, 0.0 }
 0x40b   :  { %v3564_v53 = vadd.f32 %v3563_v51, %v6051_v4  ;;  %v3625_v54 = vmax.f32 %v3560_v45, 0.0 }
 0x40c   :  { %v3626_v38 = vmax.f32 %v3562_v49, 0.0 }
 0x40d   :  { %v3627_v55 = vmax.f32 %v3564_v53, 0.0 }
 0x40e   :  { %v3652_v39 = vpack.c.bf16 %v3626_v38, %v3624_v37 }
 0x40f   :  { %v3653_v56 = vpack.c.bf16 %v3627_v55, %v3625_v54  ;;  %v3567_v40 = vpop.f32.mrb[44].mxu1 }
 0x410   :  { %v3568_v57 = vadd.f32 %v3567_v40, %v6048_v2  ;;  %v3569_v58 = vpop.f32.mrb[45].mxu1 }
 0x411   :  { %v3570_v59 = vadd.f32 %v3569_v58, %v6051_v4  ;;  %v3571_v60 = vpop.f32.mrb[46].mxu1  ;;  %3847 = vmatprep.mubr.bf16.mxu1 %v3653_v56 }
 0x412   :  { %v3572_v61 = vadd.f32 %v3571_v60, %v6048_v2  ;;  %v3573_v5 = vpop.f32.mrb[47].mxu1  ;;  %3848 = vmatmul.mubr.bf16.gmra.mrb[72].mxu1 %v3652_v39  ;;  %v3628_v47 = vmax.f32 %v3568_v57, 0.0 }
 0x413   :  { %v3574_v8 = vadd.f32 %v3573_v5, %v6051_v4  ;;  %v3629_v21 = vmax.f32 %v3570_v59, 0.0 }
 0x414   :  { %v3630_v50 = vmax.f32 %v3572_v61, 0.0 }
 0x415   :  { %v3631_v24 = vmax.f32 %v3574_v8, 0.0 }
 0x416   :  { %v3654_v48 = vpack.c.bf16 %v3630_v50, %v3628_v47  ;;  %v6088_v50 = vld [vmem:[%s6126_s8] ss:$0 sm:$0xff]  ;;  %s5318_s8 = smov [#allocation7]  }
 0x417   :  { %v3655_v52 = vpack.c.bf16 %v3631_v24, %v3629_v21  ;;  %v3577_v27 = vpop.f32.mrb[48].mxu1  ;;  %s3917_s10 = sshll.u32 %s5318_s8, 4  ;;  %s3918_s10 = int_to_ptr.vmem [resolvable:$true] %s3917_s10 }
 0x418   :  { %v3578_v30 = vadd.f32 %v3577_v27, %v6048_v2  ;;  %v3579_v62 = vpop.f32.mrb[49].mxu1  ;;  %s5283_s13 = scalar_lea.vmem %s3918_s10, 2048  ;;  %p5288_p3 = scmp.lt.s32.totalorder %s3918_s10, %s3918_s10 }
 0x419   :  { %v3580_v63 = vadd.f32 %v3579_v62, %v6051_v4  ;;  %v3581_v0 = vpop.f32.mrb[50].mxu1  ;;  %3855 = vmatprep.mubr.bf16.mxu1 %v3655_v52  ;;  %p5284_p2 = scmp.ne.s32.totalorder %s3918_s10, %s5283_s13  ;;  %p5289_p4 = scmp.lt.s32.totalorder %s5283_s13, %s5283_s13 }
 0x41a   :  { %v3582_v1 = vadd.f32 %v3581_v0, %v6048_v2  ;;  %v3583_v3 = vpop.f32.mrb[51].mxu1  ;;  %3856 = vmatmul.mubr.bf16.gmra.mrb[76].mxu1 %v3654_v48  ;;  %v3632_v7 = vmax.f32 %v3578_v30, 0.0 }
 0x41b   :  { %v3584_v6 = vadd.f32 %v3583_v3, %v6051_v4  ;;  %v3633_v10 = vmax.f32 %v3580_v63, 0.0  ;;  %p5290_p5 = por %p5289_p4, %p5288_p3 }
 0x41c   :  { %v3634_v9 = vmax.f32 %v3582_v1, 0.0 }
 0x41d   :  { %v3635_v11 = vmax.f32 %v3584_v6, 0.0  ;;  %p5291_p6 = pnand %p5290_p5, %p5284_p2 }
 0x41e   :  { %v3656_v12 = vpack.c.bf16 %v3634_v9, %v3632_v7 }
 0x41f   :  { %v3657_v13 = vpack.c.bf16 %v3635_v11, %v3633_v10  ;;  %v3587_v14 = vpop.f32.mrb[52].mxu1 }
 0x420   :  { %v3588_v15 = vadd.f32 %v3587_v14, %v6048_v2  ;;  %v3589_v16 = vpop.f32.mrb[53].mxu1 }
 0x421   :  { %v3590_v32 = vadd.f32 %v3589_v16, %v6051_v4  ;;  %v3591_v17 = vpop.f32.mrb[54].mxu1  ;;  %3863 = vmatprep.mubr.bf16.mxu1 %v3657_v13 }
 0x422   :  { %v3592_v18 = vadd.f32 %v3591_v17, %v6048_v2  ;;  %v3593_v35 = vpop.f32.mrb[55].mxu1  ;;  %3864 = vmatmul.mubr.bf16.gmra.mrb[80].mxu1 %v3656_v12  ;;  %v3636_v20 = vmax.f32 %v3588_v15, 0.0 }
 0x423   :  { %v3594_v19 = vadd.f32 %v3593_v35, %v6051_v4  ;;  %v3637_v23 = vmax.f32 %v3590_v32, 0.0 }
 0x424   :  { %v3638_v22 = vmax.f32 %v3592_v18, 0.0 }
 0x425   :  { %v3639_v25 = vmax.f32 %v3594_v19, 0.0 }
 0x426   :  { %v3658_v26 = vpack.c.bf16 %v3638_v22, %v3636_v20 }
 0x427   :  { %v3659_v28 = vpack.c.bf16 %v3639_v25, %v3637_v23  ;;  %v3597_v29 = vpop.f32.mrb[56].mxu1 }
 0x428   :  { %v3598_v31 = vadd.f32 %v3597_v29, %v6048_v2  ;;  %v3599_v33 = vpop.f32.mrb[57].mxu1 }
 0x429   :  { %v3600_v34 = vadd.f32 %v3599_v33, %v6051_v4  ;;  %v3601_v36 = vpop.f32.mrb[58].mxu1  ;;  %3871 = vmatprep.mubr.bf16.mxu1 %v3659_v28 }
 0x42a   :  { %v3602_v41 = vadd.f32 %v3601_v36, %v6048_v2  ;;  %v3603_v42 = vpop.f32.mrb[59].mxu1  ;;  %3872 = vmatmul.mubr.bf16.gmra.mrb[84].mxu1 %v3658_v26  ;;  %v3640_v44 = vmax.f32 %v3598_v31, 0.0 }
 0x42b   :  { %v3604_v43 = vadd.f32 %v3603_v42, %v6051_v4  ;;  %v3641_v46 = vmax.f32 %v3600_v34, 0.0 }
 0x42c   :  { %v3642_v45 = vmax.f32 %v3602_v41, 0.0 }
 0x42d   :  { %v3643_v49 = vmax.f32 %v3604_v43, 0.0 }
 0x42e   :  { %v3660_v51 = vpack.c.bf16 %v3642_v45, %v3640_v44 }
 0x42f   :  { %v3661_v53 = vpack.c.bf16 %v3643_v49, %v3641_v46  ;;  %v3607_v37 = vpop.f32.mrb[60].mxu1 }
 0x430   :  { %v3608_v38 = vadd.f32 %v3607_v37, %v6048_v2  ;;  %v3609_v54 = vpop.f32.mrb[61].mxu1 }
 0x431   :  { %v3610_v55 = vadd.f32 %v3609_v54, %v6051_v4  ;;  %v3611_v39 = vpop.f32.mrb[62].mxu1  ;;  %3879 = vmatprep.mubr.bf16.mxu1 %v3661_v53 }
 0x432   :  { %v3612_v56 = vadd.f32 %v3611_v39, %v6048_v2  ;;  %v3613_v40 = vpop.f32.mrb[63].mxu1  ;;  %3880 = vmatmul.mubr.bf16.gmra.mrb[88].mxu1 %v3660_v51  ;;  %v3644_v58 = vmax.f32 %v3608_v38, 0.0 }
 0x433   :  { %v3614_v57 = vadd.f32 %v3613_v40, %v6051_v4  ;;  %v3645_v60 = vmax.f32 %v3610_v55, 0.0 }
 0x434   :  { %v3646_v59 = vmax.f32 %v3612_v56, 0.0 }
 0x435   :  { %v3647_v61 = vmax.f32 %v3614_v57, 0.0 }
 0x436   :  { %v3662_v5 = vpack.c.bf16 %v3646_v59, %v3644_v58 }
 0x437   :  { %v3663_v8 = vpack.c.bf16 %v3647_v61, %v3645_v60 }
 0x439   :  { %3887 = vmatprep.mubr.bf16.mxu1 %v3663_v8 }
 0x43a   :  { %3888 = vmatmul.mubr.bf16.gmra.mrb[92].mxu1 %v3662_v5 }
 0x4d5   :  { %v4327_v47 = vpop.f32.mrb[64].mxu1 }
 0x4d6   :  { %v4328_v21 = vpop.f32.mrb[65].mxu1 }
 0x4d7   :  { %v4329_v2 = vadd.f32 %v4328_v21, %v4327_v47  ;;  %v4330_v24 = vpop.f32.mrb[66].mxu1 }
 0x4d8   :  { %v4331_v48 = vpop.f32.mrb[67].mxu1 }
 0x4d9   :  { %v3834_v4 = vadd.f32 %v4329_v2, %v6088_v50  ;;  %v4332_v52 = vadd.f32 %v4331_v48, %v4330_v24 }
 0x4db   :  { %3896 = vst [vmem:[#allocation7] sm:$0xff] %v3834_v4  ;;  %v3837_v27 = vadd.f32 %v4332_v52, %v6088_v50 }
 0x4dd   :  { %3897 = vst [vmem:[#allocation7 + $0x8] sm:$0xff] %v3837_v27  ;;  %v4333_v30 = vpop.f32.mrb[68].mxu1 }
 0x4de   :  { %v4334_v62 = vpop.f32.mrb[69].mxu1 }
 0x4df   :  { %v4335_v63 = vadd.f32 %v4334_v62, %v4333_v30  ;;  %v4336_v0 = vpop.f32.mrb[70].mxu1 }
 0x4e0   :  { %v4337_v1 = vpop.f32.mrb[71].mxu1 }
 0x4e1   :  { %v3842_v3 = vadd.f32 %v4335_v63, %v6088_v50  ;;  %v4338_v6 = vadd.f32 %v4337_v1, %v4336_v0 }
 0x4e3   :  { %3898 = vst [vmem:[#allocation7 + $0x10] sm:$0xff] %v3842_v3  ;;  %v3845_v7 = vadd.f32 %v4338_v6, %v6088_v50 }
 0x4e5   :  { %3899 = vst [vmem:[#allocation7 + $0x18] sm:$0xff] %v3845_v7  ;;  %v4339_v9 = vpop.f32.mrb[72].mxu1 }
 0x4e6   :  { %v4340_v10 = vpop.f32.mrb[73].mxu1 }
 0x4e7   :  { %v4341_v11 = vadd.f32 %v4340_v10, %v4339_v9  ;;  %v4342_v12 = vpop.f32.mrb[74].mxu1 }
 0x4e8   :  { %v4343_v13 = vpop.f32.mrb[75].mxu1 }
 0x4e9   :  { %v3850_v14 = vadd.f32 %v4341_v11, %v6088_v50  ;;  %v4344_v15 = vadd.f32 %v4343_v13, %v4342_v12 }
 0x4eb   :  { %3900 = vst [vmem:[#allocation7 + $0x20] sm:$0xff] %v3850_v14  ;;  %v3853_v16 = vadd.f32 %v4344_v15, %v6088_v50 }
 0x4ed   :  { %3901 = vst [vmem:[#allocation7 + $0x28] sm:$0xff] %v3853_v16  ;;  %v4345_v32 = vpop.f32.mrb[76].mxu1 }
 0x4ee   :  { %v4346_v17 = vpop.f32.mrb[77].mxu1 }
 0x4ef   :  { %v4347_v18 = vadd.f32 %v4346_v17, %v4345_v32  ;;  %v4348_v35 = vpop.f32.mrb[78].mxu1 }
 0x4f0   :  { %v4349_v19 = vpop.f32.mrb[79].mxu1 }
 0x4f1   :  { %v3858_v20 = vadd.f32 %v4347_v18, %v6088_v50  ;;  %v4350_v22 = vadd.f32 %v4349_v19, %v4348_v35 }
 0x4f3   :  { %3902 = vst [vmem:[#allocation7 + $0x30] sm:$0xff] %v3858_v20  ;;  %v3861_v23 = vadd.f32 %v4350_v22, %v6088_v50 }
 0x4f5   :  { %3903 = vst [vmem:[#allocation7 + $0x38] sm:$0xff] %v3861_v23  ;;  %v4351_v25 = vpop.f32.mrb[80].mxu1 }
 0x4f6   :  { %v4352_v26 = vpop.f32.mrb[81].mxu1 }
 0x4f7   :  { %v4353_v28 = vadd.f32 %v4352_v26, %v4351_v25  ;;  %v4354_v29 = vpop.f32.mrb[82].mxu1 }
 0x4f8   :  { %v4355_v31 = vpop.f32.mrb[83].mxu1 }
 0x4f9   :  { %v3866_v33 = vadd.f32 %v4353_v28, %v6088_v50  ;;  %v4356_v34 = vadd.f32 %v4355_v31, %v4354_v29 }
 0x4fb   :  { %3904 = vst [vmem:[#allocation7 + $0x40] sm:$0xff] %v3866_v33  ;;  %v3869_v36 = vadd.f32 %v4356_v34, %v6088_v50 }
 0x4fd   :  { %3905 = vst [vmem:[#allocation7 + $0x48] sm:$0xff] %v3869_v36  ;;  %v4357_v41 = vpop.f32.mrb[84].mxu1 }
 0x4fe   :  { %v4358_v42 = vpop.f32.mrb[85].mxu1 }
 0x4ff   :  { %v4359_v43 = vadd.f32 %v4358_v42, %v4357_v41  ;;  %v4360_v44 = vpop.f32.mrb[86].mxu1 }
 0x500   :  { %v4361_v45 = vpop.f32.mrb[87].mxu1 }
 0x501   :  { %v3874_v46 = vadd.f32 %v4359_v43, %v6088_v50  ;;  %v4362_v49 = vadd.f32 %v4361_v45, %v4360_v44 }
 0x503   :  { %3906 = vst [vmem:[#allocation7 + $0x50] sm:$0xff] %v3874_v46  ;;  %v3877_v51 = vadd.f32 %v4362_v49, %v6088_v50 }
 0x505   :  { %3907 = vst [vmem:[#allocation7 + $0x58] sm:$0xff] %v3877_v51  ;;  %v4363_v53 = vpop.f32.mrb[88].mxu1 }
 0x506   :  { %v4364_v37 = vpop.f32.mrb[89].mxu1 }
 0x507   :  { %v4365_v38 = vadd.f32 %v4364_v37, %v4363_v53  ;;  %v4366_v54 = vpop.f32.mrb[90].mxu1 }
 0x508   :  { %v4367_v55 = vpop.f32.mrb[91].mxu1 }
 0x509   :  { %v3882_v39 = vadd.f32 %v4365_v38, %v6088_v50  ;;  %v4368_v56 = vadd.f32 %v4367_v55, %v4366_v54 }
 0x50b   :  { %3908 = vst [vmem:[#allocation7 + $0x60] sm:$0xff] %v3882_v39  ;;  %v3885_v40 = vadd.f32 %v4368_v56, %v6088_v50 }
 0x50d   :  { %3909 = vst [vmem:[#allocation7 + $0x68] sm:$0xff] %v3885_v40  ;;  %v4369_v57 = vpop.f32.mrb[92].mxu1 }
 0x50e   :  { %v4370_v58 = vpop.f32.mrb[93].mxu1 }
 0x50f   :  { %v4371_v59 = vadd.f32 %v4370_v58, %v4369_v57  ;;  %v4372_v60 = vpop.f32.mrb[94].mxu1 }
 0x510   :  { %v4373_v61 = vpop.f32.mrb[95].mxu1 }
 0x511   :  { %v3890_v5 = vadd.f32 %v4371_v59, %v6088_v50  ;;  %v4374_v8 = vadd.f32 %v4373_v61, %v4372_v60 }
 0x513   :  { %3910 = vst [vmem:[#allocation7 + $0x70] sm:$0xff] %v3890_v5  ;;  %v3893_v47 = vadd.f32 %v4374_v8, %v6088_v50 }
 0x515   :  { %3911 = vst [vmem:[#allocation7 + $0x78] sm:$0xff] %v3893_v47 }
 0x516   :  { %5294 = shalt.err (!%p5291_p6)
}
 0x517   :  { %s5295_s15 = scalar_lea.hbm %s6127_s9, 2048 }
 0x518   :  { %p5296_p7 = scmp.ne.s32.totalorder %s6127_s9, %s5295_s15  ;;  %p5299_p8 = scmp.lt.u32.totalorder %s5295_s15, %s6127_s9 }
 0x51a   :  { %p5301_p9 = pnand %p5299_p8, %p5296_p7 }
 0x51c   :  { %5304 = shalt.err (!%p5301_p9)
}
 0x51d   :  { %s5319_s20 = smov 128   ;;  %s5320_s21 = smov 8  }
 0x51e   :  { %3923 = dma.vmem_to_hbm [thread:$0]  %s3918_s10, 2048, %s6127_s9, [#allocation4], %s5319_s20, %s5319_s20, %s5320_s21  }
 0x51f   :  { %5309 = dma.done.wait [#allocation4], 2048  }
 0x520   :  { %5310 = vsyncadd [#allocation4], 4294965248 }
 0x521   :  { %3927 = vsyncpa [#allocation3], 1 }
 0x522   :  { %3928 = vsyncpa [#allocation6], 1 }
 0x523   :  { %3929 = vsyncpa [#allocation4], 1 }

</bundles_post_ra>
